<compile_context>
chip_gen: v6e
topology: v6e:2x2x1
jax: 0.10.0
libtpu: 0.0.40
codegen_flags: <defaults>
</compile_context>

<pallas_src>
import math

import numpy as np
import jax
import jax.numpy as jnp
from jax import lax
from jax.experimental import pallas as pl
from jax.experimental.pallas import tpu as pltpu


# ----------------------------- config -----------------------------
B, T, D = 2, 8, 32          # batch, seq len, embed_dim
H = 4                       # num_heads
HD = D // H                 # head_dim
M = 64                      # mlp_dim
V = 16                      # vocab_size
VP = 128                    # vocab padded to a full lane width (lane-dense store)
NUM_LAYERS = 2
LN_EPS = 1e-5
SCALE = 1.0 / math.sqrt(HD)            # dot_product_norm=True
NEG = -1e30                            # finite mask sentinel (avoids NaN of -inf)
BT = B * T
INV_SQRT2 = 1.0 / math.sqrt(2.0)

# ---------------- packed-slab layout (all row offsets are multiples of 8) ----------------
# weight slab (W_ROWS, 128) f32: matmul weights only
OFF_WQ, OFF_WKV, OFF_WO, OFF_W1, OFF_W2 = 0, 32, 96, 128, 160
WSTRIDE = 224                               # rows per layer
OFF_OUTW = NUM_LAYERS * WSTRIDE
W_ROWS = OFF_OUTW + D

# bias/affine slab (B_ROWS, 128) f32: everything pre-broadcast to activation shape
OFF_G1, OFF_BE1, OFF_BQ, OFF_BKV = 0, 16, 32, 48
OFF_BO, OFF_G2, OFF_BE2, OFF_BM1, OFF_BM2 = 112, 128, 144, 160, 176
BSTRIDE = 192                               # rows per layer
OFF_OUTB = NUM_LAYERS * BSTRIDE
OFF_STRUCT = OFF_OUTB + BT                  # static block-diag causal bias (BT, BT)
B_ROWS = OFF_STRUCT + BT

# activation slab: x in rows [0, BT), attention_mask (f32) in row BT cols [0, BT)
XIN_ROWS = 24


# ------------------------- in-kernel helpers -------------------------
def _layer_norm(x, gamma, beta):
    mu = jnp.mean(x, axis=-1, keepdims=True)
    var = jnp.mean(jnp.square(x - mu), axis=-1, keepdims=True)
    return (x - mu) * lax.rsqrt(var + LN_EPS) * gamma + beta


def _erf(z):
    # Abramowitz & Stegun 7.1.26, |error| <= 1.5e-7: keeps exact-GELU semantics
    # without relying on an erf lowering; the exp runs on the EUP slot.
    a1, a2, a3, a4, a5 = 0.254829592, -0.284496736, 1.421413741, -1.453152027, 1.061405429
    pconst = 0.3275911
    az = jnp.abs(z)
    t = 1.0 / (1.0 + pconst * az)
    poly = ((((a5 * t + a4) * t + a3) * t + a2) * t + a1) * t
    r = 1.0 - poly * jnp.exp(-az * az)
    return jnp.where(z < 0.0, -r, r)


# ------------------------- fused forward kernel -------------------------
def fused_decoder_kernel(xin_ref, w_ref, b_ref, logits_ref):
    x = xin_ref[0:BT, :]                                   # (BT, D) activations
    amrow = xin_ref[BT:BT + 1, 0:BT]                       # (1, BT) key-padding mask (f32)

    # Additive attention bias, built once: static block-diag/causal part comes
    # pre-packed in the bias slab; only the runtime key-padding part is added.
    key_bias = jnp.where(amrow > 0.5, 0.0, NEG)            # (1, BT)
    mask_bias = b_ref[OFF_STRUCT:OFF_STRUCT + BT, 0:BT] + key_bias   # (BT, BT)

    for l in range(NUM_LAYERS):                            # unrolled; weights resident in VMEM
        wb, bb = l * WSTRIDE, l * BSTRIDE
        wq = w_ref[wb + OFF_WQ:wb + OFF_WQ + D, 0:D]             # (D, D)
        wkvT = w_ref[wb + OFF_WKV:wb + OFF_WKV + 2 * D, 0:D]     # (2D, D)
        wo = w_ref[wb + OFF_WO:wb + OFF_WO + D, 0:D]             # (D, D)
        w1 = w_ref[wb + OFF_W1:wb + OFF_W1 + D, 0:M]             # (D, M)
        w2 = w_ref[wb + OFF_W2:wb + OFF_W2 + M, 0:D]             # (M, D)

        g1 = b_ref[bb + OFF_G1:bb + OFF_G1 + BT, 0:D]
        be1 = b_ref[bb + OFF_BE1:bb + OFF_BE1 + BT, 0:D]
        bq = b_ref[bb + OFF_BQ:bb + OFF_BQ + BT, 0:D]
        bkvT = b_ref[bb + OFF_BKV:bb + OFF_BKV + 2 * D, 0:BT]
        bo = b_ref[bb + OFF_BO:bb + OFF_BO + BT, 0:D]
        g2 = b_ref[bb + OFF_G2:bb + OFF_G2 + BT, 0:D]
        be2 = b_ref[bb + OFF_BE2:bb + OFF_BE2 + BT, 0:D]
        bm1 = b_ref[bb + OFF_BM1:bb + OFF_BM1 + BT, 0:M]
        bm2 = b_ref[bb + OFF_BM2:bb + OFF_BM2 + BT, 0:D]

        # ---- multi-head self-attention (pre-norm) ----
        xn = _layer_norm(x, g1, be1)
        q = jnp.dot(xn, wq, preferred_element_type=jnp.float32) + bq         # (BT, D)
        # K and V with the head index on the SUBLANE axis: (2D, BT)
        kvT = lax.dot_general(wkvT, xn, (((1,), (1,)), ((), ())),
                              preferred_element_type=jnp.float32) + bkvT

        attn = jnp.zeros((BT, D), jnp.float32)
        for h in range(H):
            qh = q[:, h * HD:(h + 1) * HD]                 # (BT, HD)
            kh = kvT[h * HD:(h + 1) * HD, :]               # (HD, BT) sublane slice (free)
            vh = kvT[D + h * HD:D + (h + 1) * HD, :]       # (HD, BT) sublane slice (free)
            s = jnp.dot(qh, kh, preferred_element_type=jnp.float32) * SCALE + mask_bias
            p = jnp.exp(s)            # no max-sub: scores bounded, NEG underflows to 0
            p = p * pl.reciprocal(jnp.sum(p, axis=-1, keepdims=True), approx=False)
            ah = lax.dot_general(p, vh, (((1,), (1,)), ((), ())),
                                 preferred_element_type=jnp.float32)         # (BT, HD)
            # out_proj folded into the head loop: concat_h(ah) @ Wo == sum_h ah @ Wo[h]
            attn = attn + jnp.dot(ah, wo[h * HD:(h + 1) * HD, :],
                                  preferred_element_type=jnp.float32)
        x = x + attn + bo                                   # residual (dropout = 0.0)

        # ---- MLP (pre-norm, exact-erf GELU) ----
        xn2 = _layer_norm(x, g2, be2)
        h1 = jnp.dot(xn2, w1, preferred_element_type=jnp.float32) + bm1
        h1 = 0.5 * h1 * (1.0 + _erf(h1 * INV_SQRT2))
        x = x + jnp.dot(h1, w2, preferred_element_type=jnp.float32) + bm2

    # ---- vocab projection: single lane-dense (BT, 128) store ----
    outw = w_ref[OFF_OUTW:OFF_OUTW + D, :]                  # (D, 128) (zero-padded past V)
    outb = b_ref[OFF_OUTB:OFF_OUTB + BT, :]                 # (BT, 128)
    logits_ref[...] = jnp.dot(x, outw, preferred_element_type=jnp.float32) + outb


def run_fused_decoder(xin, wslab, bslab):
    vmem = lambda: pl.BlockSpec(memory_space=pltpu.MemorySpace.VMEM)
    return pl.pallas_call(
        fused_decoder_kernel,
        out_shape=jax.ShapeDtypeStruct((BT, VP), jnp.float32),
        in_specs=[vmem(), vmem(), vmem()],
        out_specs=vmem(),
    )(xin, wslab, bslab)


# ------------------------- weight packing (host side, once) -------------------------
def _put(slab, row, arr):
    arr = jnp.asarray(arr, jnp.float32)
    return slab.at[row:row + arr.shape[0], :arr.shape[1]].set(arr)


def pack_params(layer_params, out_w, out_b):
    wslab = jnp.zeros((W_ROWS, 128), jnp.float32)
    bslab = jnp.zeros((B_ROWS, 128), jnp.float32)
    bcast = lambda v: jnp.broadcast_to(v, (BT, v.shape[1]))
    for l, p in enumerate(layer_params):
        wb, bb = l * WSTRIDE, l * BSTRIDE
        wslab = _put(wslab, wb + OFF_WQ, p["wq"])
        wkvT = jnp.concatenate([p["wk"], p["wv"]], axis=1).T            # (2D, D)
        wslab = _put(wslab, wb + OFF_WKV, wkvT)
        wslab = _put(wslab, wb + OFF_WO, p["wo"])
        wslab = _put(wslab, wb + OFF_W1, p["w1"])
        wslab = _put(wslab, wb + OFF_W2, p["w2"])

        bslab = _put(bslab, bb + OFF_G1, bcast(p["g1"]))
        bslab = _put(bslab, bb + OFF_BE1, bcast(p["be1"]))
        bslab = _put(bslab, bb + OFF_BQ, bcast(p["bq"]))
        bkvT = jnp.concatenate([p["bk"], p["bv"]], axis=1).T            # (2D, 1)
        bslab = _put(bslab, bb + OFF_BKV, jnp.broadcast_to(bkvT, (2 * D, BT)))
        bslab = _put(bslab, bb + OFF_BO, bcast(p["bo"]))
        bslab = _put(bslab, bb + OFF_G2, bcast(p["g2"]))
        bslab = _put(bslab, bb + OFF_BE2, bcast(p["be2"]))
        bslab = _put(bslab, bb + OFF_BM1, bcast(p["bm1"]))
        bslab = _put(bslab, bb + OFF_BM2, bcast(p["bm2"]))

    wslab = _put(wslab, OFF_OUTW, out_w)                    # (D, V) -> zero-padded to 128 lanes
    bslab = _put(bslab, OFF_OUTB, jnp.broadcast_to(out_b, (BT, V)))

    # static block-diagonal causal structure (key-padding part is added at runtime)
    r = np.arange(BT)
    same_batch = (r[:, None] // T) == (r[None, :] // T)
    causal = (r[None, :] % T) <= (r[:, None] % T)
    struct = np.where(same_batch & causal, 0.0, NEG).astype(np.float32)
    bslab = _put(bslab, OFF_STRUCT, struct)
    return wslab, bslab


# ------------------------- full forward (kernel version) -------------------------
@jax.jit
def decoder_forward(inputs_embeds, attention_mask, labels, wslab, bslab):
    xin = jnp.zeros((XIN_ROWS, D), jnp.float32)
    xin = xin.at[:BT, :].set(inputs_embeds.reshape(BT, D))
    xin = xin.at[BT, :BT].set(attention_mask.reshape(BT).astype(jnp.float32))

    logits_p = run_fused_decoder(xin, wslab, bslab)
    logits = logits_p[:, :V].reshape(B, T, V)

    # CrossEntropyLoss(ignore_index=-100), shifted (next-token) — plain JAX glue.
    lg = logits[:, :-1, :].reshape(-1, V)
    tgt = labels[:, 1:].reshape(-1)
    valid = tgt != -100
    safe_tgt = jnp.where(valid, tgt, 0)
    logz = jax.nn.log_softmax(lg, axis=-1)
    nll = -jnp.take_along_axis(logz, safe_tgt[:, None], axis=-1)[:, 0]
    denom = jnp.maximum(jnp.sum(valid), 1).astype(jnp.float32)
    loss = jnp.sum(jnp.where(valid, nll, 0.0)) / denom
    return logits, loss


# ------------------------- pure-JAX reference (for verification) -------------------------
def _ref_block(x, mask, p):
    def ln(z, g, b):
        mu = jnp.mean(z, axis=-1, keepdims=True)
        var = jnp.mean((z - mu) ** 2, axis=-1, keepdims=True)
        return (z - mu) * lax.rsqrt(var + LN_EPS) * g[0] + b[0]

    xn = ln(x, p["g1"], p["be1"])
    q = xn @ p["wq"] + p["bq"][0]
    k = xn @ p["wk"] + p["bk"][0]
    v = xn @ p["wv"] + p["bv"][0]
    q = q.reshape(B, T, H, HD).transpose(0, 2, 1, 3)
    k = k.reshape(B, T, H, HD).transpose(0, 2, 1, 3)
    v = v.reshape(B, T, H, HD).transpose(0, 2, 1, 3)
    s = jnp.einsum("bhqd,bhkd->bhqk", q, k) * SCALE
    s = jnp.where(mask[:, None, :, :] > 0.0, s, -jnp.inf)
    a = jax.nn.softmax(s, axis=-1)
    att = jnp.einsum("bhqk,bhkd->bhqd", a, v).transpose(0, 2, 1, 3).reshape(B, T, D)
    x = x + (att @ p["wo"] + p["bo"][0])
    xn2 = ln(x, p["g2"], p["be2"])
    h1 = xn2 @ p["w1"] + p["bm1"][0]
    h1 = 0.5 * h1 * (1.0 + lax.erf(h1 / math.sqrt(2.0)))
    return x + (h1 @ p["w2"] + p["bm2"][0])


def ref_forward(inputs_embeds, attention_mask, layer_params, out_w, out_b):
    causal = jnp.tril(jnp.ones((T, T), dtype=jnp.float32))
    mask = causal[None, :, :] * attention_mask.astype(jnp.float32)[:, None, :]
    x = inputs_embeds
    for p in layer_params:
        x = _ref_block(x, mask, p)
    return x @ out_w + out_b[0]


# ------------------------- parameter init -------------------------
def init_params(key):
    layer_params = []
    for _ in range(NUM_LAYERS):
        keys = jax.random.split(key, 9)
        key = keys[0]
        p = {
            "g1": jnp.ones((1, D), jnp.float32),
            "be1": jnp.zeros((1, D), jnp.float32),
            "wq": 0.05 * jax.random.normal(keys[1], (D, D), jnp.float32),
            "bq": jnp.zeros((1, D), jnp.float32),
            "wk": 0.05 * jax.random.normal(keys[2], (D, D), jnp.float32),
            "bk": jnp.zeros((1, D), jnp.float32),
            "wv": 0.05 * jax.random.normal(keys[3], (D, D), jnp.float32),
            "bv": jnp.zeros((1, D), jnp.float32),
            "wo": 0.05 * jax.random.normal(keys[4], (D, D), jnp.float32),
            "bo": 0.01 * jax.random.normal(keys[5], (1, D), jnp.float32),
            "g2": jnp.ones((1, D), jnp.float32),
            "be2": jnp.zeros((1, D), jnp.float32),
            "w1": 0.05 * jax.random.normal(keys[6], (D, M), jnp.float32),
            "bm1": jnp.zeros((1, M), jnp.float32),
            "w2": 0.05 * jax.random.normal(keys[7], (M, D), jnp.float32),
            "bm2": 0.01 * jax.random.normal(keys[8], (1, D), jnp.float32),
        }
        layer_params.append(p)
    k1, k2 = jax.random.split(key)
    out_w = 0.05 * jax.random.normal(k1, (D, V), jnp.float32)
    out_b = jnp.zeros((1, V), jnp.float32)
    return layer_params, out_w, out_b


# ------------------------- main -------------------------
if __name__ == "__main__":
    key = jax.random.PRNGKey(0)
    k_in, k_lbl, k_par = jax.random.split(key, 3)

    inputs_embeds = jax.random.normal(k_in, (B, T, D), jnp.float32)
    attention_mask = jnp.ones((B, T), jnp.int32)
    labels = jax.random.randint(k_lbl, (B, T), 0, V).astype(jnp.int32)
    labels = labels.at[1, -1].set(-100)   # exercise ignore_index

    layer_params, out_w, out_b = init_params(k_par)
    wslab, bslab = pack_params(layer_params, out_w, out_b)

    logits, loss = decoder_forward(inputs_embeds, attention_mask, labels, wslab, bslab)
    jax.block_until_ready((logits, loss))

    # verify against pure-JAX reference
    ref_logits = ref_forward(inputs_embeds, attention_mask, layer_params, out_w, out_b)
    assert jnp.allclose(logits, ref_logits, rtol=2e-3, atol=2e-3), "mismatch vs reference"
    assert jnp.isfinite(loss), "loss not finite"

    print("KERNEL_OK")
</pallas_src>

<mosaic_0001>
module attributes {stable_mosaic.version = 11 : i64} {
  func.func @fused_decoder_kernel(%arg0: memref<24x32xf32, #tpu.memory_space<vmem>>, %arg1: memref<480x128xf32, #tpu.memory_space<vmem>>, %arg2: memref<416x128xf32, #tpu.memory_space<vmem>>, %arg3: memref<16x128xf32, #tpu.memory_space<vmem>>) attributes {dimension_semantics = [], scalar_prefetch = 0 : i64, scratch_operands = 0 : i64, tpu.core_type = #tpu.core_type<tc>} {
    %c0 = arith.constant 0 : index
    %c0_0 = arith.constant 0 : index
    %0 = vector.load %arg0[%c0, %c0_0] : memref<24x32xf32, #tpu.memory_space<vmem>>, vector<16x32xf32>
    %c16 = arith.constant 16 : index
    %c0_1 = arith.constant 0 : index
    %1 = vector.load %arg0[%c16, %c0_1] : memref<24x32xf32, #tpu.memory_space<vmem>>, vector<1x16xf32>
    %cst = arith.constant 5.000000e-01 : f32
    %2 = vector.broadcast %cst : f32 to vector<1x16xf32>
    %3 = arith.cmpf ogt, %1, %2 : vector<1x16xf32>
    %cst_2 = arith.constant 0.000000e+00 : f32
    %cst_3 = arith.constant -1.000000e+30 : f32
    %4 = vector.broadcast %cst_2 : f32 to vector<1x16xf32>
    %5 = vector.broadcast %cst_3 : f32 to vector<1x16xf32>
    %6 = arith.select %3, %4, %5 : vector<1x16xi1>, vector<1x16xf32>
    %c400 = arith.constant 400 : index
    %c0_4 = arith.constant 0 : index
    %7 = vector.load %arg2[%c400, %c0_4] : memref<416x128xf32, #tpu.memory_space<vmem>>, vector<16x16xf32>
    %8 = vector.broadcast %6 : vector<1x16xf32> to vector<16x16xf32>
    %9 = arith.addf %7, %8 : vector<16x16xf32>
    %c0_5 = arith.constant 0 : index
    %c0_6 = arith.constant 0 : index
    %10 = vector.load %arg1[%c0_5, %c0_6] : memref<480x128xf32, #tpu.memory_space<vmem>>, vector<32x32xf32>
    %c32 = arith.constant 32 : index
    %c0_7 = arith.constant 0 : index
    %11 = vector.load %arg1[%c32, %c0_7] : memref<480x128xf32, #tpu.memory_space<vmem>>, vector<64x32xf32>
    %c96 = arith.constant 96 : index
    %c0_8 = arith.constant 0 : index
    %12 = vector.load %arg1[%c96, %c0_8] : memref<480x128xf32, #tpu.memory_space<vmem>>, vector<32x32xf32>
    %c128 = arith.constant 128 : index
    %c0_9 = arith.constant 0 : index
    %13 = vector.load %arg1[%c128, %c0_9] : memref<480x128xf32, #tpu.memory_space<vmem>>, vector<32x64xf32>
    %c160 = arith.constant 160 : index
    %c0_10 = arith.constant 0 : index
    %14 = vector.load %arg1[%c160, %c0_10] : memref<480x128xf32, #tpu.memory_space<vmem>>, vector<64x32xf32>
    %c0_11 = arith.constant 0 : index
    %c0_12 = arith.constant 0 : index
    %15 = vector.load %arg2[%c0_11, %c0_12] : memref<416x128xf32, #tpu.memory_space<vmem>>, vector<16x32xf32>
    %c16_13 = arith.constant 16 : index
    %c0_14 = arith.constant 0 : index
    %16 = vector.load %arg2[%c16_13, %c0_14] : memref<416x128xf32, #tpu.memory_space<vmem>>, vector<16x32xf32>
    %c32_15 = arith.constant 32 : index
    %c0_16 = arith.constant 0 : index
    %17 = vector.load %arg2[%c32_15, %c0_16] : memref<416x128xf32, #tpu.memory_space<vmem>>, vector<16x32xf32>
    %c48 = arith.constant 48 : index
    %c0_17 = arith.constant 0 : index
    %18 = vector.load %arg2[%c48, %c0_17] : memref<416x128xf32, #tpu.memory_space<vmem>>, vector<64x16xf32>
    %c112 = arith.constant 112 : index
    %c0_18 = arith.constant 0 : index
    %19 = vector.load %arg2[%c112, %c0_18] : memref<416x128xf32, #tpu.memory_space<vmem>>, vector<16x32xf32>
    %c128_19 = arith.constant 128 : index
    %c0_20 = arith.constant 0 : index
    %20 = vector.load %arg2[%c128_19, %c0_20] : memref<416x128xf32, #tpu.memory_space<vmem>>, vector<16x32xf32>
    %c144 = arith.constant 144 : index
    %c0_21 = arith.constant 0 : index
    %21 = vector.load %arg2[%c144, %c0_21] : memref<416x128xf32, #tpu.memory_space<vmem>>, vector<16x32xf32>
    %c160_22 = arith.constant 160 : index
    %c0_23 = arith.constant 0 : index
    %22 = vector.load %arg2[%c160_22, %c0_23] : memref<416x128xf32, #tpu.memory_space<vmem>>, vector<16x64xf32>
    %c176 = arith.constant 176 : index
    %c0_24 = arith.constant 0 : index
    %23 = vector.load %arg2[%c176, %c0_24] : memref<416x128xf32, #tpu.memory_space<vmem>>, vector<16x32xf32>
    %cst_25 = arith.constant dense<0.000000e+00> : vector<16xf32>
    %24 = vector.multi_reduction <add>, %0, %cst_25 [1] : vector<16x32xf32> to vector<16xf32>
    %25 = vector.shape_cast %24 : vector<16xf32> to vector<16x1xf32>
    %cst_26 = arith.constant 3.200000e+01 : f32
    %26 = vector.broadcast %cst_26 : f32 to vector<16x1xf32>
    %27 = arith.divf %25, %26 : vector<16x1xf32>
    %28 = vector.broadcast %27 : vector<16x1xf32> to vector<16x32xf32>
    %29 = arith.subf %0, %28 : vector<16x32xf32>
    %30 = arith.mulf %29, %29 : vector<16x32xf32>
    %cst_27 = arith.constant dense<0.000000e+00> : vector<16xf32>
    %31 = vector.multi_reduction <add>, %30, %cst_27 [1] : vector<16x32xf32> to vector<16xf32>
    %32 = vector.shape_cast %31 : vector<16xf32> to vector<16x1xf32>
    %cst_28 = arith.constant 3.200000e+01 : f32
    %33 = vector.broadcast %cst_28 : f32 to vector<16x1xf32>
    %34 = arith.divf %32, %33 : vector<16x1xf32>
    %35 = vector.broadcast %27 : vector<16x1xf32> to vector<16x32xf32>
    %36 = arith.subf %0, %35 : vector<16x32xf32>
    %cst_29 = arith.constant 9.99999974E-6 : f32
    %37 = vector.broadcast %cst_29 : f32 to vector<16x1xf32>
    %38 = arith.addf %34, %37 : vector<16x1xf32>
    %39 = math.rsqrt %38 : vector<16x1xf32>
    %40 = vector.broadcast %39 : vector<16x1xf32> to vector<16x32xf32>
    %41 = arith.mulf %36, %40 : vector<16x32xf32>
    %42 = arith.mulf %41, %15 : vector<16x32xf32>
    %43 = arith.addf %42, %16 : vector<16x32xf32>
    %cst_30 = arith.constant dense<0.000000e+00> : vector<16x32xf32>
    %44 = tpu.matmul %43, %10, %cst_30 {dimension_numbers = #tpu.dot_dimension_numbers<[1], [0], [0], [1], [0, 0, 1, 1], [], []>} : vector<16x32xf32>, vector<32x32xf32>, vector<16x32xf32> -> vector<16x32xf32>
    %45 = arith.addf %44, %17 : vector<16x32xf32>
    %cst_31 = arith.constant dense<0.000000e+00> : vector<64x16xf32>
    %46 = tpu.matmul %11, %43, %cst_31 {dimension_numbers = #tpu.dot_dimension_numbers<[1], [1], [0], [0], [0, 0, 1, 0], [], []>} : vector<64x32xf32>, vector<16x32xf32>, vector<64x16xf32> -> vector<64x16xf32>
    %47 = arith.addf %46, %18 : vector<64x16xf32>
    %cst_32 = arith.constant 0.000000e+00 : f32
    %48 = vector.broadcast %cst_32 : f32 to vector<16x32xf32>
    %49 = vector.extract_strided_slice %45 {offsets = [0, 0], sizes = [16, 8], strides = [1, 1]} : vector<16x32xf32> to vector<16x8xf32>
    %50 = vector.extract_strided_slice %47 {offsets = [0, 0], sizes = [8, 16], strides = [1, 1]} : vector<64x16xf32> to vector<8x16xf32>
    %51 = vector.extract_strided_slice %47 {offsets = [32, 0], sizes = [8, 16], strides = [1, 1]} : vector<64x16xf32> to vector<8x16xf32>
    %cst_33 = arith.constant dense<0.000000e+00> : vector<16x16xf32>
    %52 = tpu.matmul %49, %50, %cst_33 {dimension_numbers = #tpu.dot_dimension_numbers<[1], [0], [0], [1], [0, 0, 1, 1], [], []>} : vector<16x8xf32>, vector<8x16xf32>, vector<16x16xf32> -> vector<16x16xf32>
    %cst_34 = arith.constant 0.353553385 : f32
    %53 = vector.broadcast %cst_34 : f32 to vector<16x16xf32>
    %54 = arith.mulf %52, %53 : vector<16x16xf32>
    %55 = arith.addf %54, %9 : vector<16x16xf32>
    %56 = math.exp %55 : vector<16x16xf32>
    %cst_35 = arith.constant dense<0.000000e+00> : vector<16xf32>
    %57 = vector.multi_reduction <add>, %56, %cst_35 [1] : vector<16x16xf32> to vector<16xf32>
    %58 = vector.shape_cast %57 : vector<16xf32> to vector<16x1xf32>
    %59 = tpu.reciprocal %58 : vector<16x1xf32> -> vector<16x1xf32>
    %60 = vector.broadcast %59 : vector<16x1xf32> to vector<16x16xf32>
    %61 = arith.mulf %56, %60 : vector<16x16xf32>
    %cst_36 = arith.constant dense<0.000000e+00> : vector<16x8xf32>
    %62 = tpu.matmul %61, %51, %cst_36 {dimension_numbers = #tpu.dot_dimension_numbers<[1], [1], [0], [0], [0, 0, 1, 0], [], []>} : vector<16x16xf32>, vector<8x16xf32>, vector<16x8xf32> -> vector<16x8xf32>
    %63 = vector.extract_strided_slice %12 {offsets = [0, 0], sizes = [8, 32], strides = [1, 1]} : vector<32x32xf32> to vector<8x32xf32>
    %cst_37 = arith.constant dense<0.000000e+00> : vector<16x32xf32>
    %64 = tpu.matmul %62, %63, %cst_37 {dimension_numbers = #tpu.dot_dimension_numbers<[1], [0], [0], [1], [0, 0, 1, 1], [], []>} : vector<16x8xf32>, vector<8x32xf32>, vector<16x32xf32> -> vector<16x32xf32>
    %65 = arith.addf %48, %64 : vector<16x32xf32>
    %66 = vector.extract_strided_slice %45 {offsets = [0, 8], sizes = [16, 8], strides = [1, 1]} : vector<16x32xf32> to vector<16x8xf32>
    %67 = vector.extract_strided_slice %47 {offsets = [8, 0], sizes = [8, 16], strides = [1, 1]} : vector<64x16xf32> to vector<8x16xf32>
    %68 = vector.extract_strided_slice %47 {offsets = [40, 0], sizes = [8, 16], strides = [1, 1]} : vector<64x16xf32> to vector<8x16xf32>
    %cst_38 = arith.constant dense<0.000000e+00> : vector<16x16xf32>
    %69 = tpu.matmul %66, %67, %cst_38 {dimension_numbers = #tpu.dot_dimension_numbers<[1], [0], [0], [1], [0, 0, 1, 1], [], []>} : vector<16x8xf32>, vector<8x16xf32>, vector<16x16xf32> -> vector<16x16xf32>
    %cst_39 = arith.constant 0.353553385 : f32
    %70 = vector.broadcast %cst_39 : f32 to vector<16x16xf32>
    %71 = arith.mulf %69, %70 : vector<16x16xf32>
    %72 = arith.addf %71, %9 : vector<16x16xf32>
    %73 = math.exp %72 : vector<16x16xf32>
    %cst_40 = arith.constant dense<0.000000e+00> : vector<16xf32>
    %74 = vector.multi_reduction <add>, %73, %cst_40 [1] : vector<16x16xf32> to vector<16xf32>
    %75 = vector.shape_cast %74 : vector<16xf32> to vector<16x1xf32>
    %76 = tpu.reciprocal %75 : vector<16x1xf32> -> vector<16x1xf32>
    %77 = vector.broadcast %76 : vector<16x1xf32> to vector<16x16xf32>
    %78 = arith.mulf %73, %77 : vector<16x16xf32>
    %cst_41 = arith.constant dense<0.000000e+00> : vector<16x8xf32>
    %79 = tpu.matmul %78, %68, %cst_41 {dimension_numbers = #tpu.dot_dimension_numbers<[1], [1], [0], [0], [0, 0, 1, 0], [], []>} : vector<16x16xf32>, vector<8x16xf32>, vector<16x8xf32> -> vector<16x8xf32>
    %80 = vector.extract_strided_slice %12 {offsets = [8, 0], sizes = [8, 32], strides = [1, 1]} : vector<32x32xf32> to vector<8x32xf32>
    %cst_42 = arith.constant dense<0.000000e+00> : vector<16x32xf32>
    %81 = tpu.matmul %79, %80, %cst_42 {dimension_numbers = #tpu.dot_dimension_numbers<[1], [0], [0], [1], [0, 0, 1, 1], [], []>} : vector<16x8xf32>, vector<8x32xf32>, vector<16x32xf32> -> vector<16x32xf32>
    %82 = arith.addf %65, %81 : vector<16x32xf32>
    %83 = vector.extract_strided_slice %45 {offsets = [0, 16], sizes = [16, 8], strides = [1, 1]} : vector<16x32xf32> to vector<16x8xf32>
    %84 = vector.extract_strided_slice %47 {offsets = [16, 0], sizes = [8, 16], strides = [1, 1]} : vector<64x16xf32> to vector<8x16xf32>
    %85 = vector.extract_strided_slice %47 {offsets = [48, 0], sizes = [8, 16], strides = [1, 1]} : vector<64x16xf32> to vector<8x16xf32>
    %cst_43 = arith.constant dense<0.000000e+00> : vector<16x16xf32>
    %86 = tpu.matmul %83, %84, %cst_43 {dimension_numbers = #tpu.dot_dimension_numbers<[1], [0], [0], [1], [0, 0, 1, 1], [], []>} : vector<16x8xf32>, vector<8x16xf32>, vector<16x16xf32> -> vector<16x16xf32>
    %cst_44 = arith.constant 0.353553385 : f32
    %87 = vector.broadcast %cst_44 : f32 to vector<16x16xf32>
    %88 = arith.mulf %86, %87 : vector<16x16xf32>
    %89 = arith.addf %88, %9 : vector<16x16xf32>
    %90 = math.exp %89 : vector<16x16xf32>
    %cst_45 = arith.constant dense<0.000000e+00> : vector<16xf32>
    %91 = vector.multi_reduction <add>, %90, %cst_45 [1] : vector<16x16xf32> to vector<16xf32>
    %92 = vector.shape_cast %91 : vector<16xf32> to vector<16x1xf32>
    %93 = tpu.reciprocal %92 : vector<16x1xf32> -> vector<16x1xf32>
    %94 = vector.broadcast %93 : vector<16x1xf32> to vector<16x16xf32>
    %95 = arith.mulf %90, %94 : vector<16x16xf32>
    %cst_46 = arith.constant dense<0.000000e+00> : vector<16x8xf32>
    %96 = tpu.matmul %95, %85, %cst_46 {dimension_numbers = #tpu.dot_dimension_numbers<[1], [1], [0], [0], [0, 0, 1, 0], [], []>} : vector<16x16xf32>, vector<8x16xf32>, vector<16x8xf32> -> vector<16x8xf32>
    %97 = vector.extract_strided_slice %12 {offsets = [16, 0], sizes = [8, 32], strides = [1, 1]} : vector<32x32xf32> to vector<8x32xf32>
    %cst_47 = arith.constant dense<0.000000e+00> : vector<16x32xf32>
    %98 = tpu.matmul %96, %97, %cst_47 {dimension_numbers = #tpu.dot_dimension_numbers<[1], [0], [0], [1], [0, 0, 1, 1], [], []>} : vector<16x8xf32>, vector<8x32xf32>, vector<16x32xf32> -> vector<16x32xf32>
    %99 = arith.addf %82, %98 : vector<16x32xf32>
    %100 = vector.extract_strided_slice %45 {offsets = [0, 24], sizes = [16, 8], strides = [1, 1]} : vector<16x32xf32> to vector<16x8xf32>
    %101 = vector.extract_strided_slice %47 {offsets = [24, 0], sizes = [8, 16], strides = [1, 1]} : vector<64x16xf32> to vector<8x16xf32>
    %102 = vector.extract_strided_slice %47 {offsets = [56, 0], sizes = [8, 16], strides = [1, 1]} : vector<64x16xf32> to vector<8x16xf32>
    %cst_48 = arith.constant dense<0.000000e+00> : vector<16x16xf32>
    %103 = tpu.matmul %100, %101, %cst_48 {dimension_numbers = #tpu.dot_dimension_numbers<[1], [0], [0], [1], [0, 0, 1, 1], [], []>} : vector<16x8xf32>, vector<8x16xf32>, vector<16x16xf32> -> vector<16x16xf32>
    %cst_49 = arith.constant 0.353553385 : f32
    %104 = vector.broadcast %cst_49 : f32 to vector<16x16xf32>
    %105 = arith.mulf %103, %104 : vector<16x16xf32>
    %106 = arith.addf %105, %9 : vector<16x16xf32>
    %107 = math.exp %106 : vector<16x16xf32>
    %cst_50 = arith.constant dense<0.000000e+00> : vector<16xf32>
    %108 = vector.multi_reduction <add>, %107, %cst_50 [1] : vector<16x16xf32> to vector<16xf32>
    %109 = vector.shape_cast %108 : vector<16xf32> to vector<16x1xf32>
    %110 = tpu.reciprocal %109 : vector<16x1xf32> -> vector<16x1xf32>
    %111 = vector.broadcast %110 : vector<16x1xf32> to vector<16x16xf32>
    %112 = arith.mulf %107, %111 : vector<16x16xf32>
    %cst_51 = arith.constant dense<0.000000e+00> : vector<16x8xf32>
    %113 = tpu.matmul %112, %102, %cst_51 {dimension_numbers = #tpu.dot_dimension_numbers<[1], [1], [0], [0], [0, 0, 1, 0], [], []>} : vector<16x16xf32>, vector<8x16xf32>, vector<16x8xf32> -> vector<16x8xf32>
    %114 = vector.extract_strided_slice %12 {offsets = [24, 0], sizes = [8, 32], strides = [1, 1]} : vector<32x32xf32> to vector<8x32xf32>
    %cst_52 = arith.constant dense<0.000000e+00> : vector<16x32xf32>
    %115 = tpu.matmul %113, %114, %cst_52 {dimension_numbers = #tpu.dot_dimension_numbers<[1], [0], [0], [1], [0, 0, 1, 1], [], []>} : vector<16x8xf32>, vector<8x32xf32>, vector<16x32xf32> -> vector<16x32xf32>
    %116 = arith.addf %99, %115 : vector<16x32xf32>
    %117 = arith.addf %0, %116 : vector<16x32xf32>
    %118 = arith.addf %117, %19 : vector<16x32xf32>
    %cst_53 = arith.constant dense<0.000000e+00> : vector<16xf32>
    %119 = vector.multi_reduction <add>, %118, %cst_53 [1] : vector<16x32xf32> to vector<16xf32>
    %120 = vector.shape_cast %119 : vector<16xf32> to vector<16x1xf32>
    %cst_54 = arith.constant 3.200000e+01 : f32
    %121 = vector.broadcast %cst_54 : f32 to vector<16x1xf32>
    %122 = arith.divf %120, %121 : vector<16x1xf32>
    %123 = vector.broadcast %122 : vector<16x1xf32> to vector<16x32xf32>
    %124 = arith.subf %118, %123 : vector<16x32xf32>
    %125 = arith.mulf %124, %124 : vector<16x32xf32>
    %cst_55 = arith.constant dense<0.000000e+00> : vector<16xf32>
    %126 = vector.multi_reduction <add>, %125, %cst_55 [1] : vector<16x32xf32> to vector<16xf32>
    %127 = vector.shape_cast %126 : vector<16xf32> to vector<16x1xf32>
    %cst_56 = arith.constant 3.200000e+01 : f32
    %128 = vector.broadcast %cst_56 : f32 to vector<16x1xf32>
    %129 = arith.divf %127, %128 : vector<16x1xf32>
    %130 = vector.broadcast %122 : vector<16x1xf32> to vector<16x32xf32>
    %131 = arith.subf %118, %130 : vector<16x32xf32>
    %cst_57 = arith.constant 9.99999974E-6 : f32
    %132 = vector.broadcast %cst_57 : f32 to vector<16x1xf32>
    %133 = arith.addf %129, %132 : vector<16x1xf32>
    %134 = math.rsqrt %133 : vector<16x1xf32>
    %135 = vector.broadcast %134 : vector<16x1xf32> to vector<16x32xf32>
    %136 = arith.mulf %131, %135 : vector<16x32xf32>
    %137 = arith.mulf %136, %20 : vector<16x32xf32>
    %138 = arith.addf %137, %21 : vector<16x32xf32>
    %cst_58 = arith.constant dense<0.000000e+00> : vector<16x64xf32>
    %139 = tpu.matmul %138, %13, %cst_58 {dimension_numbers = #tpu.dot_dimension_numbers<[1], [0], [0], [1], [0, 0, 1, 1], [], []>} : vector<16x32xf32>, vector<32x64xf32>, vector<16x64xf32> -> vector<16x64xf32>
    %140 = arith.addf %139, %22 : vector<16x64xf32>
    %cst_59 = arith.constant 5.000000e-01 : f32
    %141 = vector.broadcast %cst_59 : f32 to vector<16x64xf32>
    %142 = arith.mulf %141, %140 : vector<16x64xf32>
    %cst_60 = arith.constant 0.707106769 : f32
    %143 = vector.broadcast %cst_60 : f32 to vector<16x64xf32>
    %144 = arith.mulf %140, %143 : vector<16x64xf32>
    %145 = math.absf %144 : vector<16x64xf32>
    %cst_61 = arith.constant 0.327591091 : f32
    %146 = vector.broadcast %cst_61 : f32 to vector<16x64xf32>
    %147 = arith.mulf %146, %145 : vector<16x64xf32>
    %cst_62 = arith.constant 1.000000e+00 : f32
    %148 = vector.broadcast %cst_62 : f32 to vector<16x64xf32>
    %149 = arith.addf %148, %147 : vector<16x64xf32>
    %cst_63 = arith.constant 1.000000e+00 : f32
    %150 = vector.broadcast %cst_63 : f32 to vector<16x64xf32>
    %151 = arith.divf %150, %149 : vector<16x64xf32>
    %cst_64 = arith.constant 1.06140542 : f32
    %152 = vector.broadcast %cst_64 : f32 to vector<16x64xf32>
    %153 = arith.mulf %152, %151 : vector<16x64xf32>
    %cst_65 = arith.constant -1.45315206 : f32
    %154 = vector.broadcast %cst_65 : f32 to vector<16x64xf32>
    %155 = arith.addf %153, %154 : vector<16x64xf32>
    %156 = arith.mulf %155, %151 : vector<16x64xf32>
    %cst_66 = arith.constant 1.42141378 : f32
    %157 = vector.broadcast %cst_66 : f32 to vector<16x64xf32>
    %158 = arith.addf %156, %157 : vector<16x64xf32>
    %159 = arith.mulf %158, %151 : vector<16x64xf32>
    %cst_67 = arith.constant -0.284496725 : f32
    %160 = vector.broadcast %cst_67 : f32 to vector<16x64xf32>
    %161 = arith.addf %159, %160 : vector<16x64xf32>
    %162 = arith.mulf %161, %151 : vector<16x64xf32>
    %cst_68 = arith.constant 0.254829586 : f32
    %163 = vector.broadcast %cst_68 : f32 to vector<16x64xf32>
    %164 = arith.addf %162, %163 : vector<16x64xf32>
    %165 = arith.mulf %164, %151 : vector<16x64xf32>
    %cst_69 = arith.constant 0.000000e+00 : f32
    %166 = vector.broadcast %cst_69 : f32 to vector<16x64xf32>
    %167 = arith.subf %166, %145 : vector<16x64xf32>
    %168 = arith.mulf %167, %145 : vector<16x64xf32>
    %169 = math.exp %168 : vector<16x64xf32>
    %170 = arith.mulf %165, %169 : vector<16x64xf32>
    %cst_70 = arith.constant 1.000000e+00 : f32
    %171 = vector.broadcast %cst_70 : f32 to vector<16x64xf32>
    %172 = arith.subf %171, %170 : vector<16x64xf32>
    %cst_71 = arith.constant 0.000000e+00 : f32
    %173 = vector.broadcast %cst_71 : f32 to vector<16x64xf32>
    %174 = arith.cmpf olt, %144, %173 : vector<16x64xf32>
    %cst_72 = arith.constant 0.000000e+00 : f32
    %175 = vector.broadcast %cst_72 : f32 to vector<16x64xf32>
    %176 = arith.subf %175, %172 : vector<16x64xf32>
    %177 = arith.select %174, %176, %172 : vector<16x64xi1>, vector<16x64xf32>
    %cst_73 = arith.constant 1.000000e+00 : f32
    %178 = vector.broadcast %cst_73 : f32 to vector<16x64xf32>
    %179 = arith.addf %178, %177 : vector<16x64xf32>
    %180 = arith.mulf %142, %179 : vector<16x64xf32>
    %cst_74 = arith.constant dense<0.000000e+00> : vector<16x32xf32>
    %181 = tpu.matmul %180, %14, %cst_74 {dimension_numbers = #tpu.dot_dimension_numbers<[1], [0], [0], [1], [0, 0, 1, 1], [], []>} : vector<16x64xf32>, vector<64x32xf32>, vector<16x32xf32> -> vector<16x32xf32>
    %182 = arith.addf %118, %181 : vector<16x32xf32>
    %183 = arith.addf %182, %23 : vector<16x32xf32>
    %c224 = arith.constant 224 : index
    %c0_75 = arith.constant 0 : index
    %184 = vector.load %arg1[%c224, %c0_75] : memref<480x128xf32, #tpu.memory_space<vmem>>, vector<32x32xf32>
    %c256 = arith.constant 256 : index
    %c0_76 = arith.constant 0 : index
    %185 = vector.load %arg1[%c256, %c0_76] : memref<480x128xf32, #tpu.memory_space<vmem>>, vector<64x32xf32>
    %c320 = arith.constant 320 : index
    %c0_77 = arith.constant 0 : index
    %186 = vector.load %arg1[%c320, %c0_77] : memref<480x128xf32, #tpu.memory_space<vmem>>, vector<32x32xf32>
    %c352 = arith.constant 352 : index
    %c0_78 = arith.constant 0 : index
    %187 = vector.load %arg1[%c352, %c0_78] : memref<480x128xf32, #tpu.memory_space<vmem>>, vector<32x64xf32>
    %c384 = arith.constant 384 : index
    %c0_79 = arith.constant 0 : index
    %188 = vector.load %arg1[%c384, %c0_79] : memref<480x128xf32, #tpu.memory_space<vmem>>, vector<64x32xf32>
    %c192 = arith.constant 192 : index
    %c0_80 = arith.constant 0 : index
    %189 = vector.load %arg2[%c192, %c0_80] : memref<416x128xf32, #tpu.memory_space<vmem>>, vector<16x32xf32>
    %c208 = arith.constant 208 : index
    %c0_81 = arith.constant 0 : index
    %190 = vector.load %arg2[%c208, %c0_81] : memref<416x128xf32, #tpu.memory_space<vmem>>, vector<16x32xf32>
    %c224_82 = arith.constant 224 : index
    %c0_83 = arith.constant 0 : index
    %191 = vector.load %arg2[%c224_82, %c0_83] : memref<416x128xf32, #tpu.memory_space<vmem>>, vector<16x32xf32>
    %c240 = arith.constant 240 : index
    %c0_84 = arith.constant 0 : index
    %192 = vector.load %arg2[%c240, %c0_84] : memref<416x128xf32, #tpu.memory_space<vmem>>, vector<64x16xf32>
    %c304 = arith.constant 304 : index
    %c0_85 = arith.constant 0 : index
    %193 = vector.load %arg2[%c304, %c0_85] : memref<416x128xf32, #tpu.memory_space<vmem>>, vector<16x32xf32>
    %c320_86 = arith.constant 320 : index
    %c0_87 = arith.constant 0 : index
    %194 = vector.load %arg2[%c320_86, %c0_87] : memref<416x128xf32, #tpu.memory_space<vmem>>, vector<16x32xf32>
    %c336 = arith.constant 336 : index
    %c0_88 = arith.constant 0 : index
    %195 = vector.load %arg2[%c336, %c0_88] : memref<416x128xf32, #tpu.memory_space<vmem>>, vector<16x32xf32>
    %c352_89 = arith.constant 352 : index
    %c0_90 = arith.constant 0 : index
    %196 = vector.load %arg2[%c352_89, %c0_90] : memref<416x128xf32, #tpu.memory_space<vmem>>, vector<16x64xf32>
    %c368 = arith.constant 368 : index
    %c0_91 = arith.constant 0 : index
    %197 = vector.load %arg2[%c368, %c0_91] : memref<416x128xf32, #tpu.memory_space<vmem>>, vector<16x32xf32>
    %cst_92 = arith.constant dense<0.000000e+00> : vector<16xf32>
    %198 = vector.multi_reduction <add>, %183, %cst_92 [1] : vector<16x32xf32> to vector<16xf32>
    %199 = vector.shape_cast %198 : vector<16xf32> to vector<16x1xf32>
    %cst_93 = arith.constant 3.200000e+01 : f32
    %200 = vector.broadcast %cst_93 : f32 to vector<16x1xf32>
    %201 = arith.divf %199, %200 : vector<16x1xf32>
    %202 = vector.broadcast %201 : vector<16x1xf32> to vector<16x32xf32>
    %203 = arith.subf %183, %202 : vector<16x32xf32>
    %204 = arith.mulf %203, %203 : vector<16x32xf32>
    %cst_94 = arith.constant dense<0.000000e+00> : vector<16xf32>
    %205 = vector.multi_reduction <add>, %204, %cst_94 [1] : vector<16x32xf32> to vector<16xf32>
    %206 = vector.shape_cast %205 : vector<16xf32> to vector<16x1xf32>
    %cst_95 = arith.constant 3.200000e+01 : f32
    %207 = vector.broadcast %cst_95 : f32 to vector<16x1xf32>
    %208 = arith.divf %206, %207 : vector<16x1xf32>
    %209 = vector.broadcast %201 : vector<16x1xf32> to vector<16x32xf32>
    %210 = arith.subf %183, %209 : vector<16x32xf32>
    %cst_96 = arith.constant 9.99999974E-6 : f32
    %211 = vector.broadcast %cst_96 : f32 to vector<16x1xf32>
    %212 = arith.addf %208, %211 : vector<16x1xf32>
    %213 = math.rsqrt %212 : vector<16x1xf32>
    %214 = vector.broadcast %213 : vector<16x1xf32> to vector<16x32xf32>
    %215 = arith.mulf %210, %214 : vector<16x32xf32>
    %216 = arith.mulf %215, %189 : vector<16x32xf32>
    %217 = arith.addf %216, %190 : vector<16x32xf32>
    %cst_97 = arith.constant dense<0.000000e+00> : vector<16x32xf32>
    %218 = tpu.matmul %217, %184, %cst_97 {dimension_numbers = #tpu.dot_dimension_numbers<[1], [0], [0], [1], [0, 0, 1, 1], [], []>} : vector<16x32xf32>, vector<32x32xf32>, vector<16x32xf32> -> vector<16x32xf32>
    %219 = arith.addf %218, %191 : vector<16x32xf32>
    %cst_98 = arith.constant dense<0.000000e+00> : vector<64x16xf32>
    %220 = tpu.matmul %185, %217, %cst_98 {dimension_numbers = #tpu.dot_dimension_numbers<[1], [1], [0], [0], [0, 0, 1, 0], [], []>} : vector<64x32xf32>, vector<16x32xf32>, vector<64x16xf32> -> vector<64x16xf32>
    %221 = arith.addf %220, %192 : vector<64x16xf32>
    %cst_99 = arith.constant 0.000000e+00 : f32
    %222 = vector.broadcast %cst_99 : f32 to vector<16x32xf32>
    %223 = vector.extract_strided_slice %219 {offsets = [0, 0], sizes = [16, 8], strides = [1, 1]} : vector<16x32xf32> to vector<16x8xf32>
    %224 = vector.extract_strided_slice %221 {offsets = [0, 0], sizes = [8, 16], strides = [1, 1]} : vector<64x16xf32> to vector<8x16xf32>
    %225 = vector.extract_strided_slice %221 {offsets = [32, 0], sizes = [8, 16], strides = [1, 1]} : vector<64x16xf32> to vector<8x16xf32>
    %cst_100 = arith.constant dense<0.000000e+00> : vector<16x16xf32>
    %226 = tpu.matmul %223, %224, %cst_100 {dimension_numbers = #tpu.dot_dimension_numbers<[1], [0], [0], [1], [0, 0, 1, 1], [], []>} : vector<16x8xf32>, vector<8x16xf32>, vector<16x16xf32> -> vector<16x16xf32>
    %cst_101 = arith.constant 0.353553385 : f32
    %227 = vector.broadcast %cst_101 : f32 to vector<16x16xf32>
    %228 = arith.mulf %226, %227 : vector<16x16xf32>
    %229 = arith.addf %228, %9 : vector<16x16xf32>
    %230 = math.exp %229 : vector<16x16xf32>
    %cst_102 = arith.constant dense<0.000000e+00> : vector<16xf32>
    %231 = vector.multi_reduction <add>, %230, %cst_102 [1] : vector<16x16xf32> to vector<16xf32>
    %232 = vector.shape_cast %231 : vector<16xf32> to vector<16x1xf32>
    %233 = tpu.reciprocal %232 : vector<16x1xf32> -> vector<16x1xf32>
    %234 = vector.broadcast %233 : vector<16x1xf32> to vector<16x16xf32>
    %235 = arith.mulf %230, %234 : vector<16x16xf32>
    %cst_103 = arith.constant dense<0.000000e+00> : vector<16x8xf32>
    %236 = tpu.matmul %235, %225, %cst_103 {dimension_numbers = #tpu.dot_dimension_numbers<[1], [1], [0], [0], [0, 0, 1, 0], [], []>} : vector<16x16xf32>, vector<8x16xf32>, vector<16x8xf32> -> vector<16x8xf32>
    %237 = vector.extract_strided_slice %186 {offsets = [0, 0], sizes = [8, 32], strides = [1, 1]} : vector<32x32xf32> to vector<8x32xf32>
    %cst_104 = arith.constant dense<0.000000e+00> : vector<16x32xf32>
    %238 = tpu.matmul %236, %237, %cst_104 {dimension_numbers = #tpu.dot_dimension_numbers<[1], [0], [0], [1], [0, 0, 1, 1], [], []>} : vector<16x8xf32>, vector<8x32xf32>, vector<16x32xf32> -> vector<16x32xf32>
    %239 = arith.addf %222, %238 : vector<16x32xf32>
    %240 = vector.extract_strided_slice %219 {offsets = [0, 8], sizes = [16, 8], strides = [1, 1]} : vector<16x32xf32> to vector<16x8xf32>
    %241 = vector.extract_strided_slice %221 {offsets = [8, 0], sizes = [8, 16], strides = [1, 1]} : vector<64x16xf32> to vector<8x16xf32>
    %242 = vector.extract_strided_slice %221 {offsets = [40, 0], sizes = [8, 16], strides = [1, 1]} : vector<64x16xf32> to vector<8x16xf32>
    %cst_105 = arith.constant dense<0.000000e+00> : vector<16x16xf32>
    %243 = tpu.matmul %240, %241, %cst_105 {dimension_numbers = #tpu.dot_dimension_numbers<[1], [0], [0], [1], [0, 0, 1, 1], [], []>} : vector<16x8xf32>, vector<8x16xf32>, vector<16x16xf32> -> vector<16x16xf32>
    %cst_106 = arith.constant 0.353553385 : f32
    %244 = vector.broadcast %cst_106 : f32 to vector<16x16xf32>
    %245 = arith.mulf %243, %244 : vector<16x16xf32>
    %246 = arith.addf %245, %9 : vector<16x16xf32>
    %247 = math.exp %246 : vector<16x16xf32>
    %cst_107 = arith.constant dense<0.000000e+00> : vector<16xf32>
    %248 = vector.multi_reduction <add>, %247, %cst_107 [1] : vector<16x16xf32> to vector<16xf32>
    %249 = vector.shape_cast %248 : vector<16xf32> to vector<16x1xf32>
    %250 = tpu.reciprocal %249 : vector<16x1xf32> -> vector<16x1xf32>
    %251 = vector.broadcast %250 : vector<16x1xf32> to vector<16x16xf32>
    %252 = arith.mulf %247, %251 : vector<16x16xf32>
    %cst_108 = arith.constant dense<0.000000e+00> : vector<16x8xf32>
    %253 = tpu.matmul %252, %242, %cst_108 {dimension_numbers = #tpu.dot_dimension_numbers<[1], [1], [0], [0], [0, 0, 1, 0], [], []>} : vector<16x16xf32>, vector<8x16xf32>, vector<16x8xf32> -> vector<16x8xf32>
    %254 = vector.extract_strided_slice %186 {offsets = [8, 0], sizes = [8, 32], strides = [1, 1]} : vector<32x32xf32> to vector<8x32xf32>
    %cst_109 = arith.constant dense<0.000000e+00> : vector<16x32xf32>
    %255 = tpu.matmul %253, %254, %cst_109 {dimension_numbers = #tpu.dot_dimension_numbers<[1], [0], [0], [1], [0, 0, 1, 1], [], []>} : vector<16x8xf32>, vector<8x32xf32>, vector<16x32xf32> -> vector<16x32xf32>
    %256 = arith.addf %239, %255 : vector<16x32xf32>
    %257 = vector.extract_strided_slice %219 {offsets = [0, 16], sizes = [16, 8], strides = [1, 1]} : vector<16x32xf32> to vector<16x8xf32>
    %258 = vector.extract_strided_slice %221 {offsets = [16, 0], sizes = [8, 16], strides = [1, 1]} : vector<64x16xf32> to vector<8x16xf32>
    %259 = vector.extract_strided_slice %221 {offsets = [48, 0], sizes = [8, 16], strides = [1, 1]} : vector<64x16xf32> to vector<8x16xf32>
    %cst_110 = arith.constant dense<0.000000e+00> : vector<16x16xf32>
    %260 = tpu.matmul %257, %258, %cst_110 {dimension_numbers = #tpu.dot_dimension_numbers<[1], [0], [0], [1], [0, 0, 1, 1], [], []>} : vector<16x8xf32>, vector<8x16xf32>, vector<16x16xf32> -> vector<16x16xf32>
    %cst_111 = arith.constant 0.353553385 : f32
    %261 = vector.broadcast %cst_111 : f32 to vector<16x16xf32>
    %262 = arith.mulf %260, %261 : vector<16x16xf32>
    %263 = arith.addf %262, %9 : vector<16x16xf32>
    %264 = math.exp %263 : vector<16x16xf32>
    %cst_112 = arith.constant dense<0.000000e+00> : vector<16xf32>
    %265 = vector.multi_reduction <add>, %264, %cst_112 [1] : vector<16x16xf32> to vector<16xf32>
    %266 = vector.shape_cast %265 : vector<16xf32> to vector<16x1xf32>
    %267 = tpu.reciprocal %266 : vector<16x1xf32> -> vector<16x1xf32>
    %268 = vector.broadcast %267 : vector<16x1xf32> to vector<16x16xf32>
    %269 = arith.mulf %264, %268 : vector<16x16xf32>
    %cst_113 = arith.constant dense<0.000000e+00> : vector<16x8xf32>
    %270 = tpu.matmul %269, %259, %cst_113 {dimension_numbers = #tpu.dot_dimension_numbers<[1], [1], [0], [0], [0, 0, 1, 0], [], []>} : vector<16x16xf32>, vector<8x16xf32>, vector<16x8xf32> -> vector<16x8xf32>
    %271 = vector.extract_strided_slice %186 {offsets = [16, 0], sizes = [8, 32], strides = [1, 1]} : vector<32x32xf32> to vector<8x32xf32>
    %cst_114 = arith.constant dense<0.000000e+00> : vector<16x32xf32>
    %272 = tpu.matmul %270, %271, %cst_114 {dimension_numbers = #tpu.dot_dimension_numbers<[1], [0], [0], [1], [0, 0, 1, 1], [], []>} : vector<16x8xf32>, vector<8x32xf32>, vector<16x32xf32> -> vector<16x32xf32>
    %273 = arith.addf %256, %272 : vector<16x32xf32>
    %274 = vector.extract_strided_slice %219 {offsets = [0, 24], sizes = [16, 8], strides = [1, 1]} : vector<16x32xf32> to vector<16x8xf32>
    %275 = vector.extract_strided_slice %221 {offsets = [24, 0], sizes = [8, 16], strides = [1, 1]} : vector<64x16xf32> to vector<8x16xf32>
    %276 = vector.extract_strided_slice %221 {offsets = [56, 0], sizes = [8, 16], strides = [1, 1]} : vector<64x16xf32> to vector<8x16xf32>
    %cst_115 = arith.constant dense<0.000000e+00> : vector<16x16xf32>
    %277 = tpu.matmul %274, %275, %cst_115 {dimension_numbers = #tpu.dot_dimension_numbers<[1], [0], [0], [1], [0, 0, 1, 1], [], []>} : vector<16x8xf32>, vector<8x16xf32>, vector<16x16xf32> -> vector<16x16xf32>
    %cst_116 = arith.constant 0.353553385 : f32
    %278 = vector.broadcast %cst_116 : f32 to vector<16x16xf32>
    %279 = arith.mulf %277, %278 : vector<16x16xf32>
    %280 = arith.addf %279, %9 : vector<16x16xf32>
    %281 = math.exp %280 : vector<16x16xf32>
    %cst_117 = arith.constant dense<0.000000e+00> : vector<16xf32>
    %282 = vector.multi_reduction <add>, %281, %cst_117 [1] : vector<16x16xf32> to vector<16xf32>
    %283 = vector.shape_cast %282 : vector<16xf32> to vector<16x1xf32>
    %284 = tpu.reciprocal %283 : vector<16x1xf32> -> vector<16x1xf32>
    %285 = vector.broadcast %284 : vector<16x1xf32> to vector<16x16xf32>
    %286 = arith.mulf %281, %285 : vector<16x16xf32>
    %cst_118 = arith.constant dense<0.000000e+00> : vector<16x8xf32>
    %287 = tpu.matmul %286, %276, %cst_118 {dimension_numbers = #tpu.dot_dimension_numbers<[1], [1], [0], [0], [0, 0, 1, 0], [], []>} : vector<16x16xf32>, vector<8x16xf32>, vector<16x8xf32> -> vector<16x8xf32>
    %288 = vector.extract_strided_slice %186 {offsets = [24, 0], sizes = [8, 32], strides = [1, 1]} : vector<32x32xf32> to vector<8x32xf32>
    %cst_119 = arith.constant dense<0.000000e+00> : vector<16x32xf32>
    %289 = tpu.matmul %287, %288, %cst_119 {dimension_numbers = #tpu.dot_dimension_numbers<[1], [0], [0], [1], [0, 0, 1, 1], [], []>} : vector<16x8xf32>, vector<8x32xf32>, vector<16x32xf32> -> vector<16x32xf32>
    %290 = arith.addf %273, %289 : vector<16x32xf32>
    %291 = arith.addf %183, %290 : vector<16x32xf32>
    %292 = arith.addf %291, %193 : vector<16x32xf32>
    %cst_120 = arith.constant dense<0.000000e+00> : vector<16xf32>
    %293 = vector.multi_reduction <add>, %292, %cst_120 [1] : vector<16x32xf32> to vector<16xf32>
    %294 = vector.shape_cast %293 : vector<16xf32> to vector<16x1xf32>
    %cst_121 = arith.constant 3.200000e+01 : f32
    %295 = vector.broadcast %cst_121 : f32 to vector<16x1xf32>
    %296 = arith.divf %294, %295 : vector<16x1xf32>
    %297 = vector.broadcast %296 : vector<16x1xf32> to vector<16x32xf32>
    %298 = arith.subf %292, %297 : vector<16x32xf32>
    %299 = arith.mulf %298, %298 : vector<16x32xf32>
    %cst_122 = arith.constant dense<0.000000e+00> : vector<16xf32>
    %300 = vector.multi_reduction <add>, %299, %cst_122 [1] : vector<16x32xf32> to vector<16xf32>
    %301 = vector.shape_cast %300 : vector<16xf32> to vector<16x1xf32>
    %cst_123 = arith.constant 3.200000e+01 : f32
    %302 = vector.broadcast %cst_123 : f32 to vector<16x1xf32>
    %303 = arith.divf %301, %302 : vector<16x1xf32>
    %304 = vector.broadcast %296 : vector<16x1xf32> to vector<16x32xf32>
    %305 = arith.subf %292, %304 : vector<16x32xf32>
    %cst_124 = arith.constant 9.99999974E-6 : f32
    %306 = vector.broadcast %cst_124 : f32 to vector<16x1xf32>
    %307 = arith.addf %303, %306 : vector<16x1xf32>
    %308 = math.rsqrt %307 : vector<16x1xf32>
    %309 = vector.broadcast %308 : vector<16x1xf32> to vector<16x32xf32>
    %310 = arith.mulf %305, %309 : vector<16x32xf32>
    %311 = arith.mulf %310, %194 : vector<16x32xf32>
    %312 = arith.addf %311, %195 : vector<16x32xf32>
    %cst_125 = arith.constant dense<0.000000e+00> : vector<16x64xf32>
    %313 = tpu.matmul %312, %187, %cst_125 {dimension_numbers = #tpu.dot_dimension_numbers<[1], [0], [0], [1], [0, 0, 1, 1], [], []>} : vector<16x32xf32>, vector<32x64xf32>, vector<16x64xf32> -> vector<16x64xf32>
    %314 = arith.addf %313, %196 : vector<16x64xf32>
    %cst_126 = arith.constant 5.000000e-01 : f32
    %315 = vector.broadcast %cst_126 : f32 to vector<16x64xf32>
    %316 = arith.mulf %315, %314 : vector<16x64xf32>
    %cst_127 = arith.constant 0.707106769 : f32
    %317 = vector.broadcast %cst_127 : f32 to vector<16x64xf32>
    %318 = arith.mulf %314, %317 : vector<16x64xf32>
    %319 = math.absf %318 : vector<16x64xf32>
    %cst_128 = arith.constant 0.327591091 : f32
    %320 = vector.broadcast %cst_128 : f32 to vector<16x64xf32>
    %321 = arith.mulf %320, %319 : vector<16x64xf32>
    %cst_129 = arith.constant 1.000000e+00 : f32
    %322 = vector.broadcast %cst_129 : f32 to vector<16x64xf32>
    %323 = arith.addf %322, %321 : vector<16x64xf32>
    %cst_130 = arith.constant 1.000000e+00 : f32
    %324 = vector.broadcast %cst_130 : f32 to vector<16x64xf32>
    %325 = arith.divf %324, %323 : vector<16x64xf32>
    %cst_131 = arith.constant 1.06140542 : f32
    %326 = vector.broadcast %cst_131 : f32 to vector<16x64xf32>
    %327 = arith.mulf %326, %325 : vector<16x64xf32>
    %cst_132 = arith.constant -1.45315206 : f32
    %328 = vector.broadcast %cst_132 : f32 to vector<16x64xf32>
    %329 = arith.addf %327, %328 : vector<16x64xf32>
    %330 = arith.mulf %329, %325 : vector<16x64xf32>
    %cst_133 = arith.constant 1.42141378 : f32
    %331 = vector.broadcast %cst_133 : f32 to vector<16x64xf32>
    %332 = arith.addf %330, %331 : vector<16x64xf32>
    %333 = arith.mulf %332, %325 : vector<16x64xf32>
    %cst_134 = arith.constant -0.284496725 : f32
    %334 = vector.broadcast %cst_134 : f32 to vector<16x64xf32>
    %335 = arith.addf %333, %334 : vector<16x64xf32>
    %336 = arith.mulf %335, %325 : vector<16x64xf32>
    %cst_135 = arith.constant 0.254829586 : f32
    %337 = vector.broadcast %cst_135 : f32 to vector<16x64xf32>
    %338 = arith.addf %336, %337 : vector<16x64xf32>
    %339 = arith.mulf %338, %325 : vector<16x64xf32>
    %cst_136 = arith.constant 0.000000e+00 : f32
    %340 = vector.broadcast %cst_136 : f32 to vector<16x64xf32>
    %341 = arith.subf %340, %319 : vector<16x64xf32>
    %342 = arith.mulf %341, %319 : vector<16x64xf32>
    %343 = math.exp %342 : vector<16x64xf32>
    %344 = arith.mulf %339, %343 : vector<16x64xf32>
    %cst_137 = arith.constant 1.000000e+00 : f32
    %345 = vector.broadcast %cst_137 : f32 to vector<16x64xf32>
    %346 = arith.subf %345, %344 : vector<16x64xf32>
    %cst_138 = arith.constant 0.000000e+00 : f32
    %347 = vector.broadcast %cst_138 : f32 to vector<16x64xf32>
    %348 = arith.cmpf olt, %318, %347 : vector<16x64xf32>
    %cst_139 = arith.constant 0.000000e+00 : f32
    %349 = vector.broadcast %cst_139 : f32 to vector<16x64xf32>
    %350 = arith.subf %349, %346 : vector<16x64xf32>
    %351 = arith.select %348, %350, %346 : vector<16x64xi1>, vector<16x64xf32>
    %cst_140 = arith.constant 1.000000e+00 : f32
    %352 = vector.broadcast %cst_140 : f32 to vector<16x64xf32>
    %353 = arith.addf %352, %351 : vector<16x64xf32>
    %354 = arith.mulf %316, %353 : vector<16x64xf32>
    %cst_141 = arith.constant dense<0.000000e+00> : vector<16x32xf32>
    %355 = tpu.matmul %354, %188, %cst_141 {dimension_numbers = #tpu.dot_dimension_numbers<[1], [0], [0], [1], [0, 0, 1, 1], [], []>} : vector<16x64xf32>, vector<64x32xf32>, vector<16x32xf32> -> vector<16x32xf32>
    %356 = arith.addf %292, %355 : vector<16x32xf32>
    %357 = arith.addf %356, %197 : vector<16x32xf32>
    %c448 = arith.constant 448 : index
    %c0_142 = arith.constant 0 : index
    %358 = vector.load %arg1[%c448, %c0_142] : memref<480x128xf32, #tpu.memory_space<vmem>>, vector<32x128xf32>
    %c384_143 = arith.constant 384 : index
    %c0_144 = arith.constant 0 : index
    %359 = vector.load %arg2[%c384_143, %c0_144] : memref<416x128xf32, #tpu.memory_space<vmem>>, vector<16x128xf32>
    %cst_145 = arith.constant dense<0.000000e+00> : vector<16x128xf32>
    %360 = tpu.matmul %357, %358, %cst_145 {dimension_numbers = #tpu.dot_dimension_numbers<[1], [0], [0], [1], [0, 0, 1, 1], [], []>} : vector<16x32xf32>, vector<32x128xf32>, vector<16x128xf32> -> vector<16x128xf32>
    %361 = arith.addf %360, %359 : vector<16x128xf32>
    %c0_146 = arith.constant 0 : index
    %c0_147 = arith.constant 0 : index
    %362 = vector.load %arg3[%c0_146, %c0_147] : memref<16x128xf32, #tpu.memory_space<vmem>>, vector<16x128xf32>
    tpu.vector_store %arg3[%c0_146, %c0_147], %361 {strides = array<i32>} : memref<16x128xf32, #tpu.memory_space<vmem>>, vector<16x128xf32>,
    return
  }
}

</mosaic_0001>

<bundles_post_ra>
// kernel: sub.1
= control target key start
LH: loop header
LB: loop body
LE: loop exit
PB: predicated region body
PF: predicated region fallthrough
CT: control target
= control target key end

     0   :  { %vm8_vm0 = vcmask 56320   ;;  %vm14_vm1 = vcmask 113720   ;;  %s42_s0 = inlined_call_operand.vmem [shape: f32[2,7], index: 0, kind: input, shape index: {}]   ;;  %s43_s1 = inlined_call_operand.vmem [shape: f32[14], index: 1, kind: output, shape index: {}]  }
   0x1   :  { %v5_v0 = vld [vmem:[%s42_s0] sm:$0x3]  ;;  %s25_s0 = smov 7  }
   0x2   :  { %6 = vst [vmem:[#allocation1] sm:$0x3] %v5_v0 }
   0x9   :  { %v11_v1 = vld [vmem:[#allocation1 + $0x1] sm:$0x1]   ;;  %v7_v2 = vld [vmem:[#allocation1] sm:$0x1]  }
   0xa   :  { %12 = vrot.lane.b32.xlu0 %v11_v1, %s25_s0  ;;  %9 = vst.msk [vmem:[#allocation0] sm:$0x1] %vm8_vm0, %v7_v2  }
  0x7c   :  { %v13_v3 = vpop.permute.xlu0 %12  }
  0x7d   :  { %15 = vst.msk [vmem:[#allocation0] sm:$0x1] %vm14_vm1, %v13_v3  }
  0x84   :  { %v20_v4 = vld [vmem:[#allocation0] sm:$0x1] }
  0x85   :  { %23 = vst [vmem:[%s43_s1] sm:$0x1] %v20_v4 }

// kernel: decoder_forward.1
= control target key start
LH: loop header
LB: loop body
LE: loop exit
PB: predicated region body
PF: predicated region fallthrough
CT: control target
= control target key end

     0   :  { %8 = vsyncpa [#allocation3], 0  ;;  %s4315_s0 = inlined_call_operand.vmem [shape: f32[24,32], index: 0, kind: input, shape index: {}]   ;;  %s4316_s1 = inlined_call_operand.hbm [shape: f32[480,128], index: 1, kind: input, shape index: {}]   ;;  %s4317_s2 = inlined_call_operand.hbm [shape: f32[416,128], index: 2, kind: input, shape index: {}]   ;;  %s4318_s3 = inlined_call_operand.vmem [shape: f32[16,128], index: 3, kind: output, shape index: {}]  }
   0x1   :  { %9 = vsyncpa [#allocation5], 0  ;;  %s4004_s12 = smov [#allocation2]  }
   0x2   :  { %s17_s13 = sshll.u32 %s4004_s12, 4  ;;  %s18_s13 = int_to_ptr.vmem [resolvable:$true] %s17_s13 }
   0x3   :  { %s3968_s14 = scalar_lea.vmem %s18_s13, 7680  ;;  %p3973_p1 = scmp.lt.s32.totalorder %s18_s13, %s18_s13 }
   0x4   :  { %p3969_p0 = scmp.ne.s32.totalorder %s18_s13, %s3968_s14  ;;  %p3974_p2 = scmp.lt.s32.totalorder %s3968_s14, %s3968_s14 }
   0x6   :  { %p3975_p3 = por %p3974_p2, %p3973_p1 }
   0x8   :  { %p3976_p4 = pnand %p3975_p3, %p3969_p0 }
   0xa   :  { %3979 = shalt.err (!%p3976_p4)
}
   0xb   :  { %s4005_s15 = smov 128   ;;  %s4006_s16 = smov 8  }
   0xc   :  { %23 = dma.hbm_to_vmem [thread:$0]  %s4316_s1, 7680, %s18_s13, [#allocation3], %s4005_s15, %s4005_s15, %s4006_s16  }
   0xd   :  { %s4007_s19 = smov [#allocation4]  }
   0xe   :  { %s29_s20 = sshll.u32 %s4007_s19, 4  ;;  %s30_s20 = int_to_ptr.vmem [resolvable:$true] %s29_s20 }
   0xf   :  { %s3988_s21 = scalar_lea.vmem %s30_s20, 6656  ;;  %p3993_p6 = scmp.lt.s32.totalorder %s30_s20, %s30_s20 }
  0x10   :  { %p3989_p5 = scmp.ne.s32.totalorder %s30_s20, %s3988_s21  ;;  %p3994_p7 = scmp.lt.s32.totalorder %s3988_s21, %s3988_s21 }
  0x12   :  { %p3995_p8 = por %p3994_p7, %p3993_p6 }
  0x14   :  { %p3996_p9 = pnand %p3995_p8, %p3989_p5 }
  0x16   :  { %3999 = shalt.err (!%p3996_p9)
}
  0x17   :  { %35 = dma.hbm_to_vmem [thread:$0]  %s4317_s2, 6656, %s30_s20, [#allocation5], %s4005_s15, %s4005_s15, %s4006_s16  }
  0x18   :  { %4000 = dma.done.wait [#allocation3], 7680  }
  0x19   :  { %4001 = vsyncadd [#allocation3], 4294959616 }
  0x1a   :  { %4002 = dma.done.wait [#allocation5], 6656  }
  0x1b   :  { %4003 = vsyncadd [#allocation5], 4294960640  ;;  %vm107_vm0 = vcmask 261120   ;;  %v4041_v0 = vld [vmem:[%s4315_s0 + $0x8] sm:$0xff]  ;;  %v4046_v1 = vld [vmem:[%s4315_s0] sm:$0xff]  ;;  %vm349_vm1 = vcmask 64512   ;;  %v49_v60 = vlaneseq }
  0x1c   :  { %v111_v2 = vsel %vm107_vm0, %v4041_v0, 0.0  ;;  %v108_v3 = vsel %vm107_vm0, %v4046_v1, 0.0  ;;  %v58_v14 = vld [vmem:[#allocation2 + $0x18] sm:$0xff]  ;;  %v57_v15 = vld [vmem:[#allocation2 + $0x10] sm:$0xff]  ;;  %v56_v16 = vld [vmem:[#allocation2 + $0x8] sm:$0xff]  ;;  %vm439_vm2 = vcmask 130048  }
  0x1d   :  { %112 = vadd.xlane.f32.xlu0 %v111_v2  ;;  %3611 = vmatprep.subr.mxu0 %v58_v14  ;;  %v55_v17 = vld [vmem:[#allocation2] sm:$0xff]  ;;  %v84_v26 = vld [vmem:[#allocation4 + $0x8] sm:$0xff]  ;;  %v86_v28 = vld [vmem:[#allocation4 + $0x18] sm:$0xff]  ;;  %v50_v62 = vshrl.u32 %v49_v60, 7  ;;  %v4008_v2 = vmov -1e+30  }
  0x1e   :  { %3612 = vmatpush3.msra.mxu0 %v58_v14  ;;  %v59_v18 = vld [vmem:[#allocation2 + $0x20] sm:$0xff]  ;;  %v85_v34 = vld [vmem:[#allocation4 + $0x10] sm:$0xff]  ;;  %v60_v37 = vld [vmem:[#allocation2 + $0x28] sm:$0xff]  ;;  %s4010_s28 = smov 112   ;;  %s4011_s29 = smov 104   ;;  %vm1586_vm6 = vcmask 523264  }
  0x1f   :  { %3613 = vmatprep.subr.mxu0 %v57_v15  ;;  %3626 = vmatprep.mubr.msk.f32.mxu1 %vm107_vm0, %v59_v18  ;;  %v83_v31 = vld [vmem:[#allocation4] sm:$0xff]  ;;  %v61_v38 = vld [vmem:[#allocation2 + $0x30] sm:$0xff]  ;;  %v62_v39 = vld [vmem:[#allocation2 + $0x38] sm:$0xff]  ;;  %v51_v63 = vsub.s32 0, %v50_v62 }
  0x20   :  { %3614 = vmatpush3.msra.mxu0 %v57_v15  ;;  %v63_v40 = vld [vmem:[#allocation2 + $0x40] sm:$0xff]  ;;  %v64_v41 = vld [vmem:[#allocation2 + $0x48] sm:$0xff]  ;;  %v89_v47 = vld [vmem:[#allocation4 + $0x30] sm:$0xff] }
  0x21   :  { %109 = vadd.xlane.f32.xlu0 %v108_v3  ;;  %3615 = vmatprep.subr.mxu0 %v56_v16  ;;  %v87_v43 = vld [vmem:[#allocation4 + $0x20] sm:$0xff]  ;;  %v88_v48 = vld [vmem:[#allocation4 + $0x28] sm:$0xff]  ;;  %v93_v55 = vld [vmem:[#allocation4 + $0x50] sm:$0xff] }
  0x22   :  { %3616 = vmatpush3.msra.mxu0 %v56_v16  ;;  %v90_v56 = vld [vmem:[#allocation4 + $0x38] sm:$0xff]  ;;  %v44_v61 = vld [vmem:[%s4315_s0 + $0x10] sm:$0x1]  ;;  %s4009_s0 = smov 120  }
  0x23   :  { %3617 = vmatprep.subr.mxu0 %v55_v17  ;;  %vm45_vm3 = vcmp.gt.f32.partialorder %v44_v61, 0.5 }
  0x24   :  { %3618 = vmatpush3.msra.mxu0 %v55_v17  ;;  %v46_v3 = vsel %vm45_vm3, 0.0, %v4008_v2  ;;  %v92_v2 = vld [vmem:[#allocation4 + $0x48] sm:$0xff] }
  0xa6   :  { %v113_v4 = vpop.xlane.xlu0 %112 }
  0xa7   :  { %v116_v5 = vmul.f32 0.03125, %v113_v4  ;;  %v52_v4 = vrot.slane %v46_v3, %v51_v63 }
  0xa9   :  { %v118_v6 = vsub.f32 %v4041_v0, %v116_v5  ;;  %v48_v5 = vld [vmem:[#allocation4 + $0x198] sm:$0xff] }
  0xaa   :  { %v110_v7 = vpop.xlane.xlu0 %109 }
  0xab   :  { %v115_v8 = vmul.f32 0.03125, %v110_v7  ;;  %v120_v9 = vmul.f32 %v118_v6, %v118_v6  ;;  %v4083_v7 = vadd.f32 %v52_v4, %v48_v5 }
  0xad   :  { %v117_v10 = vsub.f32 %v4046_v1, %v115_v8  ;;  %v124_v11 = vsel %vm107_vm0, %v120_v9, 0.0 }
  0xae   :  { %125 = vadd.xlane.f32.xlu1 %v124_v11 }
  0xaf   :  { %v119_v12 = vmul.f32 %v117_v10, %v117_v10 }
  0xb1   :  { %v121_v13 = vsel %vm107_vm0, %v119_v12, 0.0 }
  0xb2   :  { %122 = vadd.xlane.f32.xlu1 %v121_v13 }
 0x137   :  { %v126_v19 = vpop.xlane.xlu1 %125 }
 0x138   :  { %v128_v20 = vmul.f32 0.03125, %v126_v19 }
 0x13a   :  { %v130_v21 = vadd.f32 1e-05, %v128_v20 }
 0x13b   :  { %v123_v22 = vpop.xlane.xlu1 %122 }
 0x13c   :  { %3864 = vrsqrt.f32 %v130_v21  ;;  %v127_v23 = vmul.f32 0.03125, %v123_v22  ;;  %v91_v21 = vld [vmem:[#allocation4 + $0x40] sm:$0xff] }
 0x13e   :  { %v129_v24 = vadd.f32 1e-05, %v127_v23  ;;  %v68_v23 = vld [vmem:[#allocation2 + $0x68] sm:$0xff] }
 0x140   :  { %3866 = vrsqrt.f32 %v129_v24  ;;  %v65_v24 = vld [vmem:[#allocation2 + $0x50] sm:$0xff] }
 0x149   :  { %v3865_v25 = vpop.eup %3864 }
 0x14a   :  { %v134_v27 = vmul.f32 %v3865_v25, %v118_v6  ;;  %v47_v6 = vld [vmem:[#allocation4 + $0x190] sm:$0xff]  ;;  %v66_v25 = vld [vmem:[#allocation2 + $0x58] sm:$0xff] }
 0x14c   :  { %v136_v29 = vmul.f32 %v134_v27, %v84_v26 }
 0x14d   :  { %v3867_v30 = vpop.eup %3866 }
 0x14e   :  { %v138_v32 = vadd.f32 %v136_v29, %v86_v28  ;;  %v133_v33 = vmul.f32 %v3867_v30, %v117_v10  ;;  %v4085_v10 = vadd.f32 %v52_v4, %v47_v6  ;;  %v94_v30 = vld [vmem:[#allocation4 + $0x58] sm:$0xff]  ;;  %v96_v6 = vld [vmem:[#allocation4 + $0x68] sm:$0xff] }
 0x150   :  { %3622 = vmatprep.subr.msk.mxu1 %vm107_vm0, %v138_v32  ;;  %v135_v35 = vmul.f32 %v133_v33, %v83_v31 }
 0x151   :  { %3623 = vmatpush3.xpose.msk.msra.mxu1 %vm107_vm0, %v138_v32 }
 0x152   :  { %v137_v36 = vadd.f32 %v135_v35, %v85_v34 }
 0x154   :  { %3619 = vmatprep.mubr.msk.f32.mxu0 %vm107_vm0, %v137_v36  ;;  %3624 = vmatprep.subr.msk.mxu1 %vm107_vm0, %v137_v36 }
 0x155   :  { %3620 = vmatmul.mubr.msk.f32.vlgmr.msra.gmra.mxu0 %vm107_vm0, %v138_v32  ;;  %3625 = vmatpush3.xpose.msk.msra.mxu1 %vm107_vm0, %v137_v36 }
 0x156   :  { %3658 = vmatprep.subr.mxu1 %v68_v23 }
 0x158   :  { %3627 = vmatmul.mubr.msk.f32.vlgmr.msra.gmra.mxu1 %vm107_vm0, %v60_v37 }
 0x159   :  { %3629 = vmatprep.mubr.msk.f32.mxu1 %vm107_vm0, %v61_v38  ;;  %3659 = vmatpush3.msra.mxu1 %v68_v23 }
 0x15c   :  { %3630 = vmatmul.mubr.msk.f32.gmra.mxu1 %vm107_vm0, %v62_v39 }
 0x15d   :  { %3632 = vmatprep.mubr.msk.f32.mxu1 %vm107_vm0, %v63_v40 }
 0x160   :  { %3633 = vmatmul.mubr.msk.f32.gmra.mxu1 %vm107_vm0, %v64_v41 }
 0x161   :  { %3635 = vmatprep.mubr.msk.f32.mxu1 %vm107_vm0, %v65_v24 }
 0x164   :  { %3636 = vmatmul.mubr.msk.f32.gmra.mxu1 %vm107_vm0, %v66_v25 }
 0x215   :  { %v3621_v42 = vpop.f32.mrf.mxu0 }
 0x216   :  { %v4074_v52 = vadd.f32 %v3621_v42, %v88_v48 }
 0x217   :  { %v211_v44 = vpop.f32.mrf.mxu0 }
 0x218   :  { %v4068_v45 = vadd.f32 %v211_v44, %v87_v43  ;;  %v3628_v46 = vpop.f32.mrf.mxu1 }
 0x219   :  { %v316_v59 = vadd.f32 %v3628_v46, %v90_v56 }
 0x21a   :  { %v310_v49 = vpop.f32.mrf.mxu1  ;;  %3640 = vmatprep.mubr.msk.f32.mxu0 %vm349_vm1, %v4068_v45 }
 0x21b   :  { %v311_v50 = vadd.f32 %v310_v49, %v89_v47 }
 0x21c   :  { %v4072_v51 = vpop.f32.mrf.mxu1 }
 0x21d   :  { %3638 = vmatprep.subr.mxu0 %v311_v50  ;;  %v326_v3 = vadd.f32 %v4072_v51, %v92_v2 }
 0x21e   :  { %v320_v53 = vpop.f32.mrf.mxu1  ;;  %3639 = vmatpush3.msra.mxu0 %v311_v50 }
 0x21f   :  { %3641 = vmatmul.mubr.msk.f32.vlgmr.msra.gmra.mxu0 %vm349_vm1, %v4074_v52  ;;  %v4091_v22 = vadd.f32 %v320_v53, %v91_v21  ;;  %v67_v53 = vld [vmem:[#allocation2 + $0x60] sm:$0xff] }
 0x220   :  { %v3634_v54 = vpop.f32.mrf.mxu1 }
 0x221   :  { %3668 = vmatprep.subr.mxu1 %v4091_v22  ;;  %v336_v33 = vadd.f32 %v3634_v54, %v94_v30 }
 0x222   :  { %v330_v57 = vpop.f32.mrf.mxu1 }
 0x223   :  { %v331_v58 = vadd.f32 %v330_v57, %v93_v55 }
 0x224   :  { %v3637_v56 = vpop.f32.mrf.mxu1 }
 0x225   :  { %3643 = vmatprep.subr.msk.mxu0 %vm439_vm2, %v331_v58 }
 0x226   :  { %3644 = vmatpush3.xpose.msk.msra.mxu0 %vm439_vm2, %v331_v58  ;;  %v340_v58 = vpop.f32.mrf.mxu1 }
 0x227   :  { %3648 = vmatprep.subr.mxu0 %v316_v59 }
 0x2df   :  { %v3642_v8 = vpop.f32.mrf.mxu0 }
 0x2e0   :  { %v432_v9 = vmul.f32 0.35355338, %v3642_v8  ;;  %v69_v8 = vld [vmem:[#allocation2 + $0x70] sm:$0xff] }
 0x2e1   :  { %v422_v11 = vpop.f32.mrf.mxu0 }
 0x2e2   :  { %v434_v12 = vadd.f32 %v432_v9, %v4083_v7  ;;  %v431_v13 = vmul.f32 0.35355338, %v422_v11  ;;  %v346_v11 = vadd.f32 %v3637_v56, %v96_v6  ;;  %v98_v6 = vld [vmem:[#allocation4 + $0x78] sm:$0xff] }
 0x2e4   :  { %v437_v14 = vmul.f32 1.442695, %v434_v12  ;;  %v433_v15 = vadd.f32 %v431_v13, %v4085_v10 }
 0x2e6   :  { %3868 = vpow2.f32 %v437_v14  ;;  %v435_v16 = vmul.f32 1.442695, %v433_v15 }
 0x2e8   :  { %3870 = vpow2.f32 %v435_v16 }
 0x2f3   :  { %v3869_v17 = vpop.eup %3868 }
 0x2f4   :  { %v443_v18 = vsel %vm439_vm2, %v3869_v17, 0.0 }
 0x2f5   :  { %v3871_v19 = vpop.eup %3870  ;;  %444 = vadd.xlane.f32.xlu1 %v443_v18 }
 0x2f6   :  { %v440_v20 = vsel %vm439_vm2, %v3871_v19, 0.0 }
 0x2f7   :  { %441 = vadd.xlane.f32.xlu0 %v440_v20 }
 0x306   :  { %536 = vrot.lane.b32.xlu1 %v4074_v52, %s4009_s0 }
 0x30d   :  { %534 = vrot.lane.b32.xlu0 %v4068_v45, %s4009_s0 }
 0x37e   :  { %v445_v26 = vpop.xlane.xlu1 %444 }
 0x37f   :  { %3872 = vrcp.f32 %v445_v26 }
 0x380   :  { %v442_v27 = vpop.xlane.xlu0 %441 }
 0x381   :  { %3874 = vrcp.f32 %v442_v27 }
 0x382   :  { %v537_v35 = vpop.permute.xlu1 %536 }
 0x384   :  { %v535_v34 = vpop.permute.xlu0 %534 }
 0x38c   :  { %v3873_v28 = vpop.eup %3872 }
 0x38d   :  { %v449_v32 = vmul.f32 %v3873_v28, %v3869_v17 }
 0x38e   :  { %v3875_v29 = vpop.eup %3874 }
 0x38f   :  { %v448_v31 = vmul.f32 %v3875_v29, %v3871_v19 }
 0x391   :  { %3645 = vmatprep.mubr.msk.f32.mxu0 %vm439_vm2, %v448_v31 }
 0x392   :  { %3646 = vmatmul.mubr.msk.f32.vlgmr.msra.gmra.mxu0 %vm439_vm2, %v449_v32 }
 0x393   :  { %3649 = vmatpush3.msra.mxu0 %v316_v59  ;;  %3650 = vmatprep.mubr.msk.f32.mxu0 %vm349_vm1, %v535_v34  ;;  %v95_v59 = vld [vmem:[#allocation4 + $0x60] sm:$0xff] }
 0x394   :  { %3653 = vmatprep.subr.msk.mxu0 %vm439_vm2, %v336_v33  ;;  %v341_v62 = vadd.f32 %v340_v58, %v95_v59 }
 0x396   :  { %3651 = vmatmul.mubr.msk.f32.vlgmr.msra.gmra.mxu0 %vm349_vm1, %v537_v35 }
 0x397   :  { %3654 = vmatpush3.xpose.msk.msra.mxu0 %vm439_vm2, %v336_v33 }
 0x398   :  { %3663 = vmatprep.subr.mxu0 %v67_v53 }
 0x452   :  { %v3647_v36 = vpop.f32.mrf.mxu0 }
 0x454   :  { %v525_v37 = vpop.f32.mrf.mxu0 }
 0x456   :  { %v3652_v38 = vpop.f32.mrf.mxu0 }
 0x457   :  { %v618_v39 = vmul.f32 0.35355338, %v3652_v38 }
 0x458   :  { %v608_v40 = vpop.f32.mrf.mxu0 }
 0x459   :  { %v620_v41 = vadd.f32 %v618_v39, %v4083_v7  ;;  %v617_v42 = vmul.f32 0.35355338, %v608_v40 }
 0x45b   :  { %v623_v43 = vmul.f32 1.442695, %v620_v41  ;;  %v619_v44 = vadd.f32 %v617_v42, %v4085_v10 }
 0x45d   :  { %3876 = vpow2.f32 %v623_v43  ;;  %v621_v46 = vmul.f32 1.442695, %v619_v44 }
 0x45f   :  { %3878 = vpow2.f32 %v621_v46 }
 0x46a   :  { %v3877_v47 = vpop.eup %3876 }
 0x46b   :  { %v628_v48 = vsel %vm439_vm2, %v3877_v47, 0.0 }
 0x46c   :  { %v3879_v49 = vpop.eup %3878  ;;  %629 = vadd.xlane.f32.xlu0 %v628_v48 }
 0x46d   :  { %v625_v50 = vsel %vm439_vm2, %v3879_v49, 0.0 }
 0x46e   :  { %626 = vadd.xlane.f32.xlu1 %v625_v50 }
 0x47f   :  { %883 = vrot.lane.b32.xlu1 %v4074_v52, %s4010_s28 }
 0x482   :  { %881 = vrot.lane.b32.xlu0 %v4068_v45, %s4010_s28 }
 0x4f5   :  { %v630_v54 = vpop.xlane.xlu0 %629 }
 0x4f6   :  { %3880 = vrcp.f32 %v630_v54 }
 0x4f7   :  { %v627_v55 = vpop.xlane.xlu1 %626 }
 0x4f8   :  { %3882 = vrcp.f32 %v627_v55 }
 0x4f9   :  { %v882_v9 = vpop.permute.xlu0 %881 }
 0x4fb   :  { %v884_v51 = vpop.permute.xlu1 %883 }
 0x503   :  { %v3881_v57 = vpop.eup %3880 }
 0x504   :  { %v634_v63 = vmul.f32 %v3881_v57, %v3877_v47 }
 0x505   :  { %v3883_v60 = vpop.eup %3882 }
 0x506   :  { %v633_v61 = vmul.f32 %v3883_v60, %v3879_v49  ;;  %v70_v60 = vld [vmem:[#allocation2 + $0x78] sm:$0xff] }
 0x508   :  { %3655 = vmatprep.mubr.msk.f32.mxu0 %vm439_vm2, %v633_v61 }
 0x509   :  { %3656 = vmatmul.mubr.msk.f32.vlgmr.msra.gmra.mxu0 %vm439_vm2, %v634_v63 }
 0x50a   :  { %3665 = vmatprep.mubr.msk.f32.mxu0 %vm349_vm1, %v525_v37  ;;  %3664 = vmatpush3.msra.mxu0 %v67_v53 }
 0x50b   :  { %3673 = vmatprep.subr.msk.mxu0 %vm439_vm2, %v341_v62 }
 0x50d   :  { %3666 = vmatmul.mubr.msk.f32.vlgmr.msra.gmra.mxu0 %vm349_vm1, %v3647_v36 }
 0x50e   :  { %3674 = vmatpush3.xpose.msk.msra.mxu0 %vm439_vm2, %v341_v62 }
 0x50f   :  { %3683 = vmatprep.subr.mxu0 %v326_v3 }
 0x5c9   :  { %v3657_v4 = vpop.f32.mrf.mxu0 }
 0x5cb   :  { %v710_v5 = vpop.f32.mrf.mxu0 }
 0x5cc   :  { %3660 = vmatprep.mubr.msk.f32.mxu1 %vm349_vm1, %v710_v5 }
 0x5cd   :  { %3661 = vmatmul.mubr.msk.f32.vlgmr.msra.gmra.mxu1 %vm349_vm1, %v3657_v4 }
 0x5ce   :  { %3669 = vmatpush3.msra.mxu1 %v4091_v22  ;;  %3670 = vmatprep.mubr.msk.f32.mxu1 %vm349_vm1, %v882_v9 }
 0x5cf   :  { %3678 = vmatprep.subr.mxu1 %v69_v8 }
 0x5d1   :  { %3671 = vmatmul.mubr.msk.f32.vlgmr.msra.gmra.mxu1 %vm349_vm1, %v884_v51  ;;  %v97_v51 = vld [vmem:[#allocation4 + $0x70] sm:$0xff] }
 0x5d2   :  { %3679 = vmatpush3.msra.mxu1 %v69_v8 }
 0x5d3   :  { %3688 = vmatprep.subr.msk.mxu1 %vm439_vm2, %v346_v11 }
 0x68d   :  { %v4127_v12 = vpop.f32.mrf.mxu1 }
 0x68f   :  { %v4129_v13 = vpop.f32.mrf.mxu1 }
 0x691   :  { %v3672_v14 = vpop.f32.mrf.mxu1 }
 0x692   :  { %v965_v15 = vmul.f32 0.35355338, %v3672_v14 }
 0x693   :  { %v955_v16 = vpop.f32.mrf.mxu1 }
 0x694   :  { %v967_v17 = vadd.f32 %v965_v15, %v4083_v7  ;;  %v964_v18 = vmul.f32 0.35355338, %v955_v16 }
 0x696   :  { %v970_v19 = vmul.f32 1.442695, %v967_v17  ;;  %v966_v20 = vadd.f32 %v964_v18, %v4085_v10 }
 0x698   :  { %3884 = vpow2.f32 %v970_v19  ;;  %v968_v21 = vmul.f32 1.442695, %v966_v20 }
 0x69a   :  { %3886 = vpow2.f32 %v968_v21 }
 0x6a5   :  { %v3885_v22 = vpop.eup %3884 }
 0x6a6   :  { %v975_v23 = vsel %vm439_vm2, %v3885_v22, 0.0 }
 0x6a7   :  { %v3887_v24 = vpop.eup %3886  ;;  %976 = vadd.xlane.f32.xlu0 %v975_v23 }
 0x6a8   :  { %v972_v25 = vsel %vm439_vm2, %v3887_v24, 0.0 }
 0x6a9   :  { %973 = vadd.xlane.f32.xlu1 %v972_v25  ;;  %v74_v25 = vld [vmem:[#allocation2 + $0x98] sm:$0xff] }
 0x6ba   :  { %1151 = vrot.lane.b32.xlu1 %v4074_v52, %s4011_s29 }
 0x6bd   :  { %1149 = vrot.lane.b32.xlu0 %v4068_v45, %s4011_s29  ;;  %v3667_v45 = vpop.f32.mrf.mxu0 }
 0x6be   :  { %v878_v57 = vadd.f32 %v3667_v45, %v4127_v12 }
 0x6bf   :  { %v872_v33 = vpop.f32.mrf.mxu0 }
 0x6c0   :  { %v873_v2 = vadd.f32 %v872_v33, %v4129_v13 }
 0x730   :  { %v977_v26 = vpop.xlane.xlu0 %976 }
 0x731   :  { %3888 = vrcp.f32 %v977_v26  ;;  %v73_v26 = vld [vmem:[#allocation2 + $0x90] sm:$0xff] }
 0x732   :  { %v974_v27 = vpop.xlane.xlu1 %973 }
 0x733   :  { %3890 = vrcp.f32 %v974_v27  ;;  %v72_v27 = vld [vmem:[#allocation2 + $0x88] sm:$0xff] }
 0x734   :  { %v1150_v32 = vpop.permute.xlu0 %1149 }
 0x736   :  { %v1152_v52 = vpop.permute.xlu1 %1151 }
 0x73e   :  { %v3889_v28 = vpop.eup %3888 }
 0x73f   :  { %v981_v31 = vmul.f32 %v3889_v28, %v3885_v22  ;;  %v71_v28 = vld [vmem:[#allocation2 + $0x80] sm:$0xff] }
 0x740   :  { %v3891_v29 = vpop.eup %3890 }
 0x741   :  { %v980_v30 = vmul.f32 %v3891_v29, %v3887_v24 }
 0x743   :  { %3675 = vmatprep.mubr.msk.f32.mxu0 %vm439_vm2, %v980_v30 }
 0x744   :  { %3676 = vmatmul.mubr.msk.f32.vlgmr.msra.gmra.mxu0 %vm439_vm2, %v981_v31 }
 0x745   :  { %3684 = vmatpush3.msra.mxu0 %v326_v3  ;;  %3685 = vmatprep.mubr.msk.f32.mxu0 %vm349_vm1, %v1150_v32 }
 0x746   :  { %3693 = vmatprep.subr.mxu0 %v70_v60 }
 0x748   :  { %3686 = vmatmul.mubr.msk.f32.vlgmr.msra.gmra.mxu0 %vm349_vm1, %v1152_v52 }
 0x749   :  { %3694 = vmatpush3.msra.mxu0 %v70_v60 }
 0x804   :  { %v3677_v34 = vpop.f32.mrf.mxu0 }
 0x806   :  { %v1057_v35 = vpop.f32.mrf.mxu0 }
 0x807   :  { %3680 = vmatprep.mubr.msk.f32.mxu1 %vm349_vm1, %v1057_v35  ;;  %v100_v35 = vld [vmem:[#allocation4 + $0x88] sm:$0xff] }
 0x808   :  { %3681 = vmatmul.mubr.msk.f32.vlgmr.msra.gmra.mxu1 %vm349_vm1, %v3677_v34  ;;  %v3687_v36 = vpop.f32.mrf.mxu0 }
 0x809   :  { %v1233_v37 = vmul.f32 0.35355338, %v3687_v36  ;;  %3689 = vmatpush3.xpose.msk.msra.mxu1 %vm439_vm2, %v346_v11 }
 0x80a   :  { %v1223_v38 = vpop.f32.mrf.mxu0  ;;  %3698 = vmatprep.subr.mxu1 %v74_v25 }
 0x80b   :  { %v1235_v39 = vadd.f32 %v1233_v37, %v4083_v7  ;;  %v1232_v40 = vmul.f32 0.35355338, %v1223_v38  ;;  %v99_v37 = vld [vmem:[#allocation4 + $0x80] sm:$0xff] }
 0x80d   :  { %v1238_v41 = vmul.f32 1.442695, %v1235_v39  ;;  %v1234_v42 = vadd.f32 %v1232_v40, %v4085_v10  ;;  %v101_v39 = vld [vmem:[#allocation4 + $0x90] sm:$0xff] }
 0x80f   :  { %3892 = vpow2.f32 %v1238_v41  ;;  %v1236_v43 = vmul.f32 1.442695, %v1234_v42  ;;  %v102_v42 = vld [vmem:[#allocation4 + $0x98] sm:$0xff] }
 0x811   :  { %3894 = vpow2.f32 %v1236_v43 }
 0x81c   :  { %v3893_v44 = vpop.eup %3892 }
 0x81d   :  { %v1243_v46 = vsel %vm439_vm2, %v3893_v44, 0.0 }
 0x81e   :  { %v3895_v47 = vpop.eup %3894  ;;  %1244 = vadd.xlane.f32.xlu0 %v1243_v46  ;;  %v82_v46 = vld [vmem:[#allocation2 + $0xd8] sm:$0xff] }
 0x81f   :  { %v1240_v48 = vsel %vm439_vm2, %v3895_v47, 0.0  ;;  %3709 = vmatprep.subr.mxu0 %v82_v46 }
 0x820   :  { %1241 = vadd.xlane.f32.xlu1 %v1240_v48  ;;  %v80_v48 = vld [vmem:[#allocation2 + $0xc8] sm:$0xff] }
 0x8a7   :  { %v1245_v49 = vpop.xlane.xlu0 %1244 }
 0x8a8   :  { %3896 = vrcp.f32 %v1245_v49  ;;  %v79_v49 = vld [vmem:[#allocation2 + $0xc0] sm:$0xff] }
 0x8a9   :  { %v1242_v50 = vpop.xlane.xlu1 %1241 }
 0x8aa   :  { %3898 = vrcp.f32 %v1242_v50  ;;  %v78_v50 = vld [vmem:[#allocation2 + $0xb8] sm:$0xff] }
 0x8b5   :  { %v3897_v53 = vpop.eup %3896 }
 0x8b6   :  { %v1249_v56 = vmul.f32 %v3897_v53, %v3893_v44  ;;  %v77_v53 = vld [vmem:[#allocation2 + $0xb0] sm:$0xff] }
 0x8b7   :  { %v3899_v54 = vpop.eup %3898 }
 0x8b8   :  { %v1248_v55 = vmul.f32 %v3899_v54, %v3895_v47  ;;  %v81_v47 = vld [vmem:[#allocation2 + $0xd0] sm:$0xff]  ;;  %v76_v54 = vld [vmem:[#allocation2 + $0xa8] sm:$0xff] }
 0x8ba   :  { %3690 = vmatprep.mubr.msk.f32.mxu1 %vm439_vm2, %v1248_v55  ;;  %v75_v55 = vld [vmem:[#allocation2 + $0xa0] sm:$0xff] }
 0x8bb   :  { %3691 = vmatmul.mubr.msk.f32.vlgmr.msra.gmra.mxu1 %vm439_vm2, %v1249_v56  ;;  %v104_v56 = vld [vmem:[#allocation4 + $0xa8] sm:$0xff] }
 0x8bc   :  { %3699 = vmatpush3.msra.mxu1 %v74_v25 }
 0x8bd   :  { %3700 = vmatprep.subr.mxu1 %v73_v26 }
 0x8be   :  { %3701 = vmatpush3.msra.mxu1 %v73_v26 }
 0x8bf   :  { %3702 = vmatprep.subr.mxu1 %v72_v27 }
 0x8c0   :  { %3703 = vmatpush3.msra.mxu1 %v72_v27 }
 0x8c1   :  { %3704 = vmatprep.subr.mxu1 %v71_v28 }
 0x8c2   :  { %3705 = vmatpush3.msra.mxu1 %v71_v28 }
 0x8c8   :  { %v3682_v58 = vpop.f32.mrf.mxu1 }
 0x8c9   :  { %v1148_v59 = vadd.f32 %v3682_v58, %v878_v57  ;;  %v103_v58 = vld [vmem:[#allocation4 + $0xa0] sm:$0xff] }
 0x8ca   :  { %v1138_v61 = vpop.f32.mrf.mxu1 }
 0x8cb   :  { %v1147_v4 = vadd.f32 %v1138_v61, %v873_v2 }
 0x97b   :  { %v3692_v62 = vpop.f32.mrf.mxu1 }
 0x97d   :  { %v1325_v63 = vpop.f32.mrf.mxu1 }
 0x97e   :  { %3695 = vmatprep.mubr.msk.f32.mxu0 %vm349_vm1, %v1325_v63 }
 0x97f   :  { %3696 = vmatmul.mubr.msk.f32.vlgmr.msra.gmra.mxu0 %vm349_vm1, %v3692_v62 }
 0x980   :  { %3710 = vmatpush3.msra.mxu0 %v82_v46 }
 0x981   :  { %3711 = vmatprep.subr.mxu0 %v81_v47 }
 0x982   :  { %3712 = vmatpush3.msra.mxu0 %v81_v47 }
 0x983   :  { %3713 = vmatprep.subr.mxu0 %v80_v48 }
 0x984   :  { %3714 = vmatpush3.msra.mxu0 %v80_v48 }
 0x985   :  { %3715 = vmatprep.subr.mxu0 %v79_v49 }
 0x986   :  { %3716 = vmatpush3.msra.mxu0 %v79_v49 }
 0x987   :  { %3717 = vmatprep.subr.mxu0 %v78_v50 }
 0x988   :  { %3718 = vmatpush3.msra.mxu0 %v78_v50  ;;  %v106_v50 = vld [vmem:[#allocation4 + $0xb8] sm:$0xff] }
 0x989   :  { %3719 = vmatprep.subr.mxu0 %v77_v53 }
 0x98a   :  { %3720 = vmatpush3.msra.mxu0 %v77_v53 }
 0x98b   :  { %3721 = vmatprep.subr.mxu0 %v76_v54 }
 0x98c   :  { %3722 = vmatpush3.msra.mxu0 %v76_v54 }
 0x98d   :  { %3723 = vmatprep.subr.mxu0 %v75_v55 }
 0x98e   :  { %3724 = vmatpush3.msra.mxu0 %v75_v55  ;;  %v105_v55 = vld [vmem:[#allocation4 + $0xb0] sm:$0xff] }
 0xa3f   :  { %v3697_v3 = vpop.f32.mrf.mxu0 }
 0xa40   :  { %v1416_v5 = vadd.f32 %v3697_v3, %v1148_v59 }
 0xa41   :  { %v1406_v8 = vpop.f32.mrf.mxu0 }
 0xa42   :  { %v1418_v9 = vadd.f32 %v1416_v5, %v4041_v0  ;;  %v1415_v11 = vadd.f32 %v1406_v8, %v1147_v4 }
 0xa44   :  { %v4157_v12 = vadd.f32 %v1418_v9, %v98_v6  ;;  %v1417_v14 = vadd.f32 %v1415_v11, %v4046_v1 }
 0xa46   :  { %v4160_v15 = vadd.f32 %v1417_v14, %v97_v51  ;;  %v1424_v16 = vsel %vm107_vm0, %v4157_v12, 0.0 }
 0xa47   :  { %1425 = vadd.xlane.f32.xlu1 %v1424_v16 }
 0xa48   :  { %v1421_v13 = vsel %vm107_vm0, %v4160_v15, 0.0 }
 0xa49   :  { %1422 = vadd.xlane.f32.xlu0 %v1421_v13 }
 0xad0   :  { %v1426_v17 = vpop.xlane.xlu1 %1425 }
 0xad1   :  { %v1428_v18 = vmul.f32 0.03125, %v1426_v17 }
 0xad2   :  { %v1423_v19 = vpop.xlane.xlu0 %1422 }
 0xad3   :  { %v1430_v0 = vsub.f32 %v4157_v12, %v1428_v18  ;;  %v1427_v20 = vmul.f32 0.03125, %v1423_v19 }
 0xad5   :  { %v1429_v21 = vsub.f32 %v4160_v15, %v1427_v20  ;;  %v1432_v22 = vmul.f32 %v1430_v0, %v1430_v0 }
 0xad7   :  { %v1436_v1 = vsel %vm107_vm0, %v1432_v22, 0.0  ;;  %v1431_v23 = vmul.f32 %v1429_v21, %v1429_v21 }
 0xad8   :  { %1437 = vadd.xlane.f32.xlu1 %v1436_v1 }
 0xad9   :  { %v1433_v24 = vsel %vm107_vm0, %v1431_v23, 0.0 }
 0xada   :  { %1434 = vadd.xlane.f32.xlu0 %v1433_v24 }
 0xb61   :  { %v1438_v29 = vpop.xlane.xlu1 %1437 }
 0xb62   :  { %v1440_v30 = vmul.f32 0.03125, %v1438_v29 }
 0xb63   :  { %v1435_v31 = vpop.xlane.xlu0 %1434 }
 0xb64   :  { %v1442_v32 = vadd.f32 1e-05, %v1440_v30  ;;  %v1439_v52 = vmul.f32 0.03125, %v1435_v31 }
 0xb66   :  { %3900 = vrsqrt.f32 %v1442_v32  ;;  %v1441_v45 = vadd.f32 1e-05, %v1439_v52 }
 0xb68   :  { %3902 = vrsqrt.f32 %v1441_v45 }
 0xb73   :  { %v3901_v33 = vpop.eup %3900 }
 0xb74   :  { %v1446_v34 = vmul.f32 %v3901_v33, %v1430_v0 }
 0xb75   :  { %v3903_v36 = vpop.eup %3902 }
 0xb76   :  { %v1445_v38 = vmul.f32 %v3903_v36, %v1429_v21  ;;  %v1448_v40 = vmul.f32 %v1446_v34, %v100_v35 }
 0xb78   :  { %v1447_v41 = vmul.f32 %v1445_v38, %v99_v37  ;;  %v1450_v44 = vadd.f32 %v1448_v40, %v102_v42 }
 0xb7a   :  { %v1449_v43 = vadd.f32 %v1447_v41, %v101_v39 }
 0xb7c   :  { %3706 = vmatprep.mubr.msk.f32.mxu1 %vm107_vm0, %v1449_v43 }
 0xb7d   :  { %3707 = vmatmul.mubr.msk.f32.vlgmr.msra.gmra.mxu1 %vm107_vm0, %v1450_v44 }
 0xc3d   :  { %v3708_v57 = vpop.f32.mrf.mxu1 }
 0xc3e   :  { %v1529_v59 = vadd.f32 %v3708_v57, %v104_v56 }
 0xc3f   :  { %v1523_v60 = vpop.f32.mrf.mxu1 }
 0xc40   :  { %v1535_v61 = vmul.f32 0.70710677, %v1529_v59  ;;  %v1524_v62 = vadd.f32 %v1523_v60, %v103_v58  ;;  %v1533_v47 = vmul.f32 0.5, %v1529_v59 }
 0xc42   :  { %v1537_v63 = vand.u32 2147483647, %v1535_v61  ;;  %v1534_v2 = vmul.f32 0.70710677, %v1524_v62  ;;  %vm1577_vm4 = vcmp.lt.f32.partialorder %v1535_v61, 0.0  ;;  %v1532_v44 = vmul.f32 0.5, %v1524_v62 }
 0xc44   :  { %v1539_v3 = vmul.f32 0.3275911, %v1537_v63  ;;  %v1536_v4 = vand.u32 2147483647, %v1534_v2  ;;  %v1565_v9 = vsub.f32 0.0, %v1537_v63  ;;  %vm1576_vm5 = vcmp.lt.f32.partialorder %v1534_v2, 0.0 }
 0xc46   :  { %v1541_v5 = vadd.f32 1.0, %v1539_v3  ;;  %v1538_v6 = vmul.f32 0.3275911, %v1536_v4  ;;  %v1564_v11 = vsub.f32 0.0, %v1536_v4  ;;  %v1567_v51 = vmul.f32 %v1565_v9, %v1537_v63  ;;  %v1675_v9 = vld [vmem:[#allocation2 + $0xf8] sm:$0xff] }
 0xc47   :  { %3728 = vmatprep.subr.mxu1 %v1675_v9 }
 0xc48   :  { %3904 = vrcp.f32 %v1541_v5  ;;  %v1540_v8 = vadd.f32 1.0, %v1538_v6  ;;  %v1566_v16 = vmul.f32 %v1564_v11, %v1536_v4  ;;  %v1570_v17 = vmul.f32 1.442695, %v1567_v51  ;;  %v1674_v11 = vld [vmem:[#allocation2 + $0xf0] sm:$0xff]  ;;  %3729 = vmatpush3.msra.mxu1 %v1675_v9  ;;  %v1673_v51 = vld [vmem:[#allocation2 + $0xe8] sm:$0xff] }
 0xc49   :  { %3730 = vmatprep.subr.mxu1 %v1674_v11 }
 0xc4a   :  { %3906 = vrcp.f32 %v1540_v8  ;;  %v1568_v20 = vmul.f32 1.442695, %v1566_v16  ;;  %3731 = vmatpush3.msra.mxu1 %v1674_v11 }
 0xc4b   :  { %3908 = vpow2.f32 %v1570_v17  ;;  %3732 = vmatprep.subr.mxu1 %v1673_v51 }
 0xc4c   :  { %3910 = vpow2.f32 %v1568_v20  ;;  %3733 = vmatpush3.msra.mxu1 %v1673_v51 }
 0xc55   :  { %v3905_v14 = vpop.eup %3904 }
 0xc56   :  { %v1547_v13 = vmul.f32 1.0614054, %v3905_v14 }
 0xc57   :  { %v3907_v18 = vpop.eup %3906 }
 0xc58   :  { %v1549_v19 = vadd.f32 -1.4531521, %v1547_v13  ;;  %v1546_v0 = vmul.f32 1.0614054, %v3907_v18  ;;  %v3909_v52 = vpop.eup %3908 }
 0xc59   :  { %v3911_v35 = vpop.eup %3910 }
 0xc5a   :  { %v1551_v21 = vmul.f32 %v3905_v14, %v1549_v19  ;;  %v1548_v22 = vadd.f32 -1.4531521, %v1546_v0 }
 0xc5c   :  { %v1553_v1 = vadd.f32 1.4214138, %v1551_v21  ;;  %v1550_v23 = vmul.f32 %v3907_v18, %v1548_v22  ;;  %v1701_v21 = vld [vmem:[#allocation4 + $0xc8] sm:$0xff] }
 0xc5e   :  { %v1555_v24 = vmul.f32 %v3905_v14, %v1553_v1  ;;  %v1552_v25 = vadd.f32 1.4214138, %v1550_v23  ;;  %v1703_v23 = vld [vmem:[#allocation4 + $0xd8] sm:$0xff] }
 0xc60   :  { %v1557_v26 = vadd.f32 -0.28449672, %v1555_v24  ;;  %v1554_v27 = vmul.f32 %v3907_v18, %v1552_v25  ;;  %v1700_v24 = vld [vmem:[#allocation4 + $0xc0] sm:$0xff] }
 0xc62   :  { %v1559_v28 = vmul.f32 %v3905_v14, %v1557_v26  ;;  %v1556_v29 = vadd.f32 -0.28449672, %v1554_v27  ;;  %v1702_v27 = vld [vmem:[#allocation4 + $0xd0] sm:$0xff] }
 0xc64   :  { %v1561_v30 = vadd.f32 0.2548296, %v1559_v28  ;;  %v1558_v31 = vmul.f32 %v3907_v18, %v1556_v29 }
 0xc66   :  { %v1563_v32 = vmul.f32 %v3905_v14, %v1561_v30  ;;  %v1560_v45 = vadd.f32 0.2548296, %v1558_v31  ;;  %v1672_v14 = vld [vmem:[#allocation2 + $0xe0] sm:$0xff] }
 0xc67   :  { %3734 = vmatprep.subr.mxu1 %v1672_v14  ;;  %v1676_v31 = vld [vmem:[#allocation2 + $0x100] sm:$0xff] }
 0xc68   :  { %v1573_v33 = vmul.f32 %v3909_v52, %v1563_v32  ;;  %v1562_v34 = vmul.f32 %v3907_v18, %v1560_v45  ;;  %3735 = vmatpush3.msra.mxu1 %v1672_v14  ;;  %v1677_v32 = vld [vmem:[#allocation2 + $0x108] sm:$0xff]  ;;  %v1678_v52 = vld [vmem:[#allocation2 + $0x110] sm:$0xff]  ;;  %v1679_v45 = vld [vmem:[#allocation2 + $0x118] sm:$0xff] }
 0xc6a   :  { %v1575_v36 = vsub.f32 1.0, %v1573_v33  ;;  %v1572_v37 = vmul.f32 %v3911_v35, %v1562_v34  ;;  %v1680_v33 = vld [vmem:[#allocation2 + $0x120] sm:$0xff]  ;;  %v1681_v34 = vld [vmem:[#allocation2 + $0x128] sm:$0xff] }
 0xc6c   :  { %v1579_v38 = vsub.f32 0.0, %v1575_v36  ;;  %v1574_v39 = vsub.f32 1.0, %v1572_v37 }
 0xc6e   :  { %v1581_v40 = vsel %vm1577_vm4, %v1579_v38, %v1575_v36  ;;  %v1578_v41 = vsub.f32 0.0, %v1574_v39  ;;  %v1704_v36 = vld [vmem:[#allocation4 + $0xe0] sm:$0xff] }
 0xc6f   :  { %v1583_v42 = vadd.f32 1.0, %v1581_v40  ;;  %v1706_v40 = vld [vmem:[#allocation4 + $0xf0] sm:$0xff] }
 0xc70   :  { %v1580_v43 = vsel %vm1576_vm5, %v1578_v41, %v1574_v39  ;;  %v1705_v41 = vld [vmem:[#allocation4 + $0xe8] sm:$0xff] }
 0xc71   :  { %v1582_v46 = vadd.f32 1.0, %v1580_v43  ;;  %v1585_v49 = vmul.f32 %v1583_v42, %v1533_v47 }
 0xc73   :  { %v1584_v48 = vmul.f32 %v1582_v46, %v1532_v44 }
 0xc75   :  { %3725 = vmatprep.mubr.msk.f32.mxu0 %vm1586_vm6, %v1584_v48 }
 0xc76   :  { %3726 = vmatmul.mubr.msk.f32.vlgmr.msra.gmra.mxu0 %vm1586_vm6, %v1585_v49  ;;  %v1710_v49 = vld [vmem:[#allocation4 + $0x110] sm:$0xff] }
 0xd36   :  { %v3727_v53 = vpop.f32.mrf.mxu0 }
 0xd37   :  { %v1669_v54 = vadd.f32 %v3727_v53, %v4157_v12 }
 0xd38   :  { %v1659_v56 = vpop.f32.mrf.mxu0 }
 0xd39   :  { %v4175_v57 = vadd.f32 %v1669_v54, %v106_v50  ;;  %v1668_v58 = vadd.f32 %v1659_v56, %v4160_v15  ;;  %v1707_v50 = vld [vmem:[#allocation4 + $0xf8] sm:$0xff] }
 0xd3b   :  { %v4178_v60 = vadd.f32 %v1668_v58, %v105_v55  ;;  %v1727_v59 = vsel %vm107_vm0, %v4175_v57, 0.0 }
 0xd3c   :  { %1728 = vadd.xlane.f32.xlu1 %v1727_v59 }
 0xd3d   :  { %v1724_v61 = vsel %vm107_vm0, %v4178_v60, 0.0 }
 0xd3e   :  { %1725 = vadd.xlane.f32.xlu0 %v1724_v61 }
 0xdc5   :  { %v1729_v62 = vpop.xlane.xlu1 %1728 }
 0xdc6   :  { %v1731_v63 = vmul.f32 0.03125, %v1729_v62 }
 0xdc7   :  { %v1726_v2 = vpop.xlane.xlu0 %1725 }
 0xdc8   :  { %v1733_v12 = vsub.f32 %v4175_v57, %v1731_v63  ;;  %v1730_v3 = vmul.f32 0.03125, %v1726_v2 }
 0xdca   :  { %v1732_v4 = vsub.f32 %v4178_v60, %v1730_v3  ;;  %v1735_v5 = vmul.f32 %v1733_v12, %v1733_v12 }
 0xdcc   :  { %v1739_v15 = vsel %vm107_vm0, %v1735_v5, 0.0  ;;  %v1734_v6 = vmul.f32 %v1732_v4, %v1732_v4 }
 0xdcd   :  { %1740 = vadd.xlane.f32.xlu1 %v1739_v15 }
 0xdce   :  { %v1736_v8 = vsel %vm107_vm0, %v1734_v6, 0.0  ;;  %v1682_v6 = vld [vmem:[#allocation2 + $0x130] sm:$0xff] }
 0xdcf   :  { %1737 = vadd.xlane.f32.xlu0 %v1736_v8  ;;  %v1683_v8 = vld [vmem:[#allocation2 + $0x138] sm:$0xff] }
 0xe56   :  { %v1741_v16 = vpop.xlane.xlu1 %1740 }
 0xe57   :  { %v1743_v13 = vmul.f32 0.03125, %v1741_v16  ;;  %v1711_v16 = vld [vmem:[#allocation4 + $0x118] sm:$0xff] }
 0xe58   :  { %v1738_v17 = vpop.xlane.xlu0 %1737 }
 0xe59   :  { %v1745_v18 = vadd.f32 1e-05, %v1743_v13  ;;  %v1742_v19 = vmul.f32 0.03125, %v1738_v17 }
 0xe5b   :  { %3912 = vrsqrt.f32 %v1745_v18  ;;  %v1744_v0 = vadd.f32 1e-05, %v1742_v19 }
 0xe5d   :  { %3914 = vrsqrt.f32 %v1744_v0 }
 0xe68   :  { %v3913_v20 = vpop.eup %3912 }
 0xe69   :  { %v1749_v22 = vmul.f32 %v3913_v20, %v1733_v12 }
 0xe6a   :  { %v3915_v1 = vpop.eup %3914 }
 0xe6b   :  { %v1751_v25 = vmul.f32 %v1749_v22, %v1701_v21  ;;  %v1748_v26 = vmul.f32 %v3915_v1, %v1732_v4  ;;  %v1712_v22 = vld [vmem:[#allocation4 + $0x120] sm:$0xff] }
 0xe6d   :  { %v1753_v28 = vadd.f32 %v1751_v25, %v1703_v23  ;;  %v1750_v29 = vmul.f32 %v1748_v26, %v1700_v24  ;;  %v1684_v23 = vld [vmem:[#allocation2 + $0x140] sm:$0xff]  ;;  %v1709_v25 = vld [vmem:[#allocation4 + $0x108] sm:$0xff] }
 0xe6f   :  { %3739 = vmatprep.subr.msk.mxu1 %vm107_vm0, %v1753_v28  ;;  %v1752_v30 = vadd.f32 %v1750_v29, %v1702_v27 }
 0xe71   :  { %3736 = vmatprep.mubr.msk.f32.mxu1 %vm107_vm0, %v1752_v30 }
 0xe72   :  { %3737 = vmatmul.mubr.msk.f32.vlgmr.msra.gmra.mxu1 %vm107_vm0, %v1753_v28 }
 0xe73   :  { %3740 = vmatpush3.xpose.msk.msra.mxu1 %vm107_vm0, %v1753_v28  ;;  %3743 = vmatprep.mubr.msk.f32.mxu1 %vm107_vm0, %v1676_v31 }
 0xe74   :  { %3741 = vmatprep.subr.msk.mxu1 %vm107_vm0, %v1752_v30 }
 0xe77   :  { %3742 = vmatpush3.xpose.msk.msra.mxu1 %vm107_vm0, %v1752_v30 }
 0xe78   :  { %3780 = vmatprep.subr.mxu1 %v1684_v23 }
 0xe7a   :  { %3744 = vmatmul.mubr.msk.f32.vlgmr.msra.gmra.mxu1 %vm107_vm0, %v1677_v32 }
 0xe7b   :  { %3746 = vmatprep.mubr.msk.f32.mxu1 %vm107_vm0, %v1678_v52  ;;  %3781 = vmatpush3.msra.mxu1 %v1684_v23 }
 0xe7e   :  { %3747 = vmatmul.mubr.msk.f32.gmra.mxu1 %vm107_vm0, %v1679_v45 }
 0xe7f   :  { %3749 = vmatprep.mubr.msk.f32.mxu1 %vm107_vm0, %v1680_v33 }
 0xe82   :  { %3750 = vmatmul.mubr.msk.f32.gmra.mxu1 %vm107_vm0, %v1681_v34 }
 0xe83   :  { %3752 = vmatprep.mubr.msk.f32.mxu1 %vm107_vm0, %v1682_v6 }
 0xe86   :  { %3753 = vmatmul.mubr.msk.f32.gmra.mxu1 %vm107_vm0, %v1683_v8 }
 0xf32   :  { %v3738_v35 = vpop.f32.mrf.mxu1 }
 0xf33   :  { %v4206_v46 = vadd.f32 %v3738_v35, %v1705_v41 }
 0xf34   :  { %v1826_v37 = vpop.f32.mrf.mxu1 }
 0xf35   :  { %v4200_v38 = vadd.f32 %v1826_v37, %v1704_v36 }
 0xf37   :  { %3757 = vmatprep.mubr.msk.f32.mxu0 %vm349_vm1, %v4200_v38 }
 0xf3a   :  { %v3745_v39 = vpop.f32.mrf.mxu1 }
 0xf3b   :  { %v1931_v55 = vadd.f32 %v3745_v39, %v1707_v50  ;;  %v1685_v39 = vld [vmem:[#allocation2 + $0x148] sm:$0xff] }
 0xf3c   :  { %v1925_v42 = vpop.f32.mrf.mxu1 }
 0xf3d   :  { %v1926_v43 = vadd.f32 %v1925_v42, %v1706_v40 }
 0xf3e   :  { %v4204_v44 = vpop.f32.mrf.mxu1 }
 0xf3f   :  { %3755 = vmatprep.subr.mxu0 %v1926_v43  ;;  %v4235_v27 = vadd.f32 %v4204_v44, %v1709_v25  ;;  %v1708_v44 = vld [vmem:[#allocation4 + $0x100] sm:$0xff] }
 0xf40   :  { %v4208_v47 = vpop.f32.mrf.mxu1  ;;  %3756 = vmatpush3.msra.mxu0 %v1926_v43 }
 0xf41   :  { %3758 = vmatmul.mubr.msk.f32.vlgmr.msra.gmra.mxu0 %vm349_vm1, %v4206_v46  ;;  %v1936_v50 = vadd.f32 %v4208_v47, %v1708_v44 }
 0xf42   :  { %v3751_v48 = vpop.f32.mrf.mxu1 }
 0xf43   :  { %v1951_v18 = vadd.f32 %v3751_v48, %v1711_v16 }
 0xf44   :  { %v1945_v53 = vpop.f32.mrf.mxu1 }
 0xf45   :  { %v1946_v54 = vadd.f32 %v1945_v53, %v1710_v49 }
 0xf46   :  { %v4230_v20 = vpop.f32.mrf.mxu1 }
 0xf47   :  { %3760 = vmatprep.subr.msk.mxu0 %vm439_vm2, %v1946_v54 }
 0xf48   :  { %3761 = vmatpush3.xpose.msk.msra.mxu0 %vm439_vm2, %v1946_v54  ;;  %v1955_v21 = vpop.f32.mrf.mxu1 }
 0xf49   :  { %3765 = vmatprep.subr.mxu0 %v1931_v55  ;;  %v1956_v1 = vadd.f32 %v1955_v21, %v1712_v22 }
 0xf4b   :  { %3790 = vmatprep.subr.msk.mxu1 %vm439_vm2, %v1956_v1 }
0x1001   :  { %v3759_v56 = vpop.f32.mrf.mxu0 }
0x1002   :  { %v2046_v58 = vmul.f32 0.35355338, %v3759_v56 }
0x1003   :  { %v2036_v59 = vpop.f32.mrf.mxu0 }
0x1004   :  { %v2048_v61 = vadd.f32 %v2046_v58, %v4083_v7  ;;  %v2045_v62 = vmul.f32 0.35355338, %v2036_v59 }
0x1006   :  { %v2051_v63 = vmul.f32 1.442695, %v2048_v61  ;;  %v2047_v2 = vadd.f32 %v2045_v62, %v4085_v10 }
0x1008   :  { %3916 = vpow2.f32 %v2051_v63  ;;  %v2049_v12 = vmul.f32 1.442695, %v2047_v2 }
0x100a   :  { %3918 = vpow2.f32 %v2049_v12 }
0x1015   :  { %v3917_v3 = vpop.eup %3916 }
0x1016   :  { %v2056_v4 = vsel %vm439_vm2, %v3917_v3, 0.0 }
0x1017   :  { %v3919_v5 = vpop.eup %3918  ;;  %2057 = vadd.xlane.f32.xlu1 %v2056_v4 }
0x1018   :  { %v2053_v15 = vsel %vm439_vm2, %v3919_v5, 0.0 }
0x1019   :  { %2054 = vadd.xlane.f32.xlu0 %v2053_v15 }
0x1028   :  { %2149 = vrot.lane.b32.xlu1 %v4206_v46, %s4009_s0 }
0x102f   :  { %2147 = vrot.lane.b32.xlu0 %v4200_v38, %s4009_s0 }
0x10a0   :  { %v2058_v9 = vpop.xlane.xlu1 %2057 }
0x10a1   :  { %3920 = vrcp.f32 %v2058_v9  ;;  %v1713_v9 = vld [vmem:[#allocation4 + $0x128] sm:$0xff] }
0x10a2   :  { %v2055_v11 = vpop.xlane.xlu0 %2054 }
0x10a3   :  { %3922 = vrcp.f32 %v2055_v11  ;;  %v1961_v11 = vadd.f32 %v4230_v20, %v1713_v9  ;;  %v1691_v9 = vld [vmem:[#allocation2 + $0x178] sm:$0xff] }
0x10a4   :  { %v2150_v0 = vpop.permute.xlu1 %2149 }
0x10a6   :  { %v2148_v19 = vpop.permute.xlu0 %2147 }
0x10ae   :  { %v3921_v51 = vpop.eup %3920 }
0x10af   :  { %v2062_v17 = vmul.f32 %v3921_v51, %v3917_v3  ;;  %v1686_v51 = vld [vmem:[#allocation2 + $0x150] sm:$0xff] }
0x10b0   :  { %v3923_v14 = vpop.eup %3922 }
0x10b1   :  { %v2061_v13 = vmul.f32 %v3923_v14, %v3919_v5 }
0x10b3   :  { %3762 = vmatprep.mubr.msk.f32.mxu0 %vm439_vm2, %v2061_v13 }
0x10b4   :  { %3763 = vmatmul.mubr.msk.f32.vlgmr.msra.gmra.mxu0 %vm439_vm2, %v2062_v17 }
0x10b5   :  { %3766 = vmatpush3.msra.mxu0 %v1931_v55  ;;  %3767 = vmatprep.mubr.msk.f32.mxu0 %vm349_vm1, %v2148_v19 }
0x10b6   :  { %3770 = vmatprep.subr.msk.mxu0 %vm439_vm2, %v1951_v18 }
0x10b8   :  { %3768 = vmatmul.mubr.msk.f32.vlgmr.msra.gmra.mxu0 %vm349_vm1, %v2150_v0 }
0x10b9   :  { %3771 = vmatpush3.xpose.msk.msra.mxu0 %vm439_vm2, %v1951_v18 }
0x10ba   :  { %3775 = vmatprep.subr.mxu0 %v1685_v39 }
0x1174   :  { %v3764_v24 = vpop.f32.mrf.mxu0 }
0x1176   :  { %v2138_v26 = vpop.f32.mrf.mxu0 }
0x1177   :  { %3782 = vmatprep.mubr.msk.f32.mxu1 %vm349_vm1, %v2138_v26 }
0x1178   :  { %v3769_v28 = vpop.f32.mrf.mxu0  ;;  %3783 = vmatmul.mubr.msk.f32.vlgmr.msra.gmra.mxu1 %vm349_vm1, %v3764_v24 }
0x1179   :  { %v2231_v29 = vmul.f32 0.35355338, %v3769_v28  ;;  %3791 = vmatpush3.xpose.msk.msra.mxu1 %vm439_vm2, %v1956_v1 }
0x117a   :  { %3800 = vmatprep.subr.mxu1 %v4235_v27  ;;  %v2221_v30 = vpop.f32.mrf.mxu0 }
0x117b   :  { %v2233_v31 = vadd.f32 %v2231_v29, %v4083_v7  ;;  %v2230_v32 = vmul.f32 0.35355338, %v2221_v30 }
0x117d   :  { %v2236_v52 = vmul.f32 1.442695, %v2233_v31  ;;  %v2232_v45 = vadd.f32 %v2230_v32, %v4085_v10 }
0x117f   :  { %3924 = vpow2.f32 %v2236_v52  ;;  %v2234_v33 = vmul.f32 1.442695, %v2232_v45 }
0x1181   :  { %3926 = vpow2.f32 %v2234_v33 }
0x118c   :  { %v3925_v34 = vpop.eup %3924 }
0x118d   :  { %v2241_v35 = vsel %vm439_vm2, %v3925_v34, 0.0 }
0x118e   :  { %v3927_v36 = vpop.eup %3926  ;;  %2242 = vadd.xlane.f32.xlu0 %v2241_v35 }
0x118f   :  { %v2238_v37 = vsel %vm439_vm2, %v3927_v36, 0.0 }
0x1190   :  { %2239 = vadd.xlane.f32.xlu1 %v2238_v37 }
0x11a1   :  { %2496 = vrot.lane.b32.xlu1 %v4206_v46, %s4010_s28 }
0x11a4   :  { %2494 = vrot.lane.b32.xlu0 %v4200_v38, %s4010_s28 }
0x1217   :  { %v2243_v40 = vpop.xlane.xlu0 %2242 }
0x1218   :  { %3928 = vrcp.f32 %v2243_v40  ;;  %v1687_v40 = vld [vmem:[#allocation2 + $0x158] sm:$0xff] }
0x1219   :  { %v2240_v41 = vpop.xlane.xlu1 %2239 }
0x121a   :  { %3930 = vrcp.f32 %v2240_v41 }
0x121b   :  { %v2495_v55 = vpop.permute.xlu0 %2494 }
0x121d   :  { %v2497_v56 = vpop.permute.xlu1 %2496 }
0x1225   :  { %v3929_v42 = vpop.eup %3928 }
0x1226   :  { %v2247_v49 = vmul.f32 %v3929_v42, %v3925_v34 }
0x1227   :  { %v3931_v43 = vpop.eup %3930 }
0x1228   :  { %v2246_v48 = vmul.f32 %v3931_v43, %v3927_v36 }
0x122a   :  { %3772 = vmatprep.mubr.msk.f32.mxu0 %vm439_vm2, %v2246_v48 }
0x122b   :  { %3773 = vmatmul.mubr.msk.f32.vlgmr.msra.gmra.mxu0 %vm439_vm2, %v2247_v49 }
0x122c   :  { %3776 = vmatpush3.msra.mxu0 %v1685_v39 }
0x122d   :  { %3785 = vmatprep.subr.mxu0 %v1936_v50 }
0x12eb   :  { %v3774_v53 = vpop.f32.mrf.mxu0 }
0x12ed   :  { %v2323_v54 = vpop.f32.mrf.mxu0 }
0x12ee   :  { %3777 = vmatprep.mubr.msk.f32.mxu0 %vm349_vm1, %v2323_v54 }
0x12ef   :  { %3778 = vmatmul.mubr.msk.f32.vlgmr.msra.gmra.mxu0 %vm349_vm1, %v3774_v53  ;;  %v1715_v53 = vld [vmem:[#allocation4 + $0x138] sm:$0xff] }
0x12f0   :  { %3786 = vmatpush3.msra.mxu0 %v1936_v50  ;;  %3787 = vmatprep.mubr.msk.f32.mxu0 %vm349_vm1, %v2495_v55 }
0x12f1   :  { %3795 = vmatprep.subr.mxu0 %v1686_v51 }
0x12f3   :  { %3788 = vmatmul.mubr.msk.f32.vlgmr.msra.gmra.mxu0 %vm349_vm1, %v2497_v56 }
0x12f4   :  { %3796 = vmatpush3.msra.mxu0 %v1686_v51  ;;  %v1689_v51 = vld [vmem:[#allocation2 + $0x168] sm:$0xff] }
0x12f5   :  { %3805 = vmatprep.subr.msk.mxu0 %vm439_vm2, %v1961_v11 }
0x13af   :  { %v4255_v58 = vpop.f32.mrf.mxu0 }
0x13b1   :  { %v4257_v47 = vpop.f32.mrf.mxu0 }
0x13b3   :  { %v3789_v59 = vpop.f32.mrf.mxu0 }
0x13b4   :  { %v2578_v61 = vmul.f32 0.35355338, %v3789_v59 }
0x13b5   :  { %v2568_v62 = vpop.f32.mrf.mxu0 }
0x13b6   :  { %v2580_v63 = vadd.f32 %v2578_v61, %v4083_v7  ;;  %v2577_v2 = vmul.f32 0.35355338, %v2568_v62 }
0x13b8   :  { %v2583_v12 = vmul.f32 1.442695, %v2580_v63  ;;  %v2579_v3 = vadd.f32 %v2577_v2, %v4085_v10 }
0x13ba   :  { %3932 = vpow2.f32 %v2583_v12  ;;  %v2581_v4 = vmul.f32 1.442695, %v2579_v3 }
0x13bc   :  { %3934 = vpow2.f32 %v2581_v4 }
0x13c7   :  { %v3933_v5 = vpop.eup %3932 }
0x13c8   :  { %v2588_v15 = vsel %vm439_vm2, %v3933_v5, 0.0 }
0x13c9   :  { %v3935_v6 = vpop.eup %3934  ;;  %2589 = vadd.xlane.f32.xlu0 %v2588_v15 }
0x13ca   :  { %v2585_v8 = vsel %vm439_vm2, %v3935_v6, 0.0 }
0x13cb   :  { %2586 = vadd.xlane.f32.xlu1 %v2585_v8 }
0x13dc   :  { %2764 = vrot.lane.b32.xlu1 %v4206_v46, %s4011_s29 }
0x13df   :  { %2762 = vrot.lane.b32.xlu0 %v4200_v38, %s4011_s29  ;;  %v3784_v38 = vpop.f32.mrf.mxu1 }
0x13e1   :  { %v2485_v20 = vpop.f32.mrf.mxu1 }
0x13e2   :  { %v2486_v44 = vadd.f32 %v2485_v20, %v4257_v47  ;;  %v1717_v20 = vld [vmem:[#allocation4 + $0x148] sm:$0xff] }
0x1452   :  { %v2590_v14 = vpop.xlane.xlu0 %2589 }
0x1453   :  { %3936 = vrcp.f32 %v2590_v14  ;;  %v1688_v14 = vld [vmem:[#allocation2 + $0x160] sm:$0xff] }
0x1454   :  { %v2587_v16 = vpop.xlane.xlu1 %2586 }
0x1455   :  { %3938 = vrcp.f32 %v2587_v16 }
0x1456   :  { %v2763_v0 = vpop.permute.xlu0 %2762 }
0x1458   :  { %v2765_v46 = vpop.permute.xlu1 %2764 }
0x1460   :  { %v3937_v13 = vpop.eup %3936 }
0x1461   :  { %v2594_v19 = vmul.f32 %v3937_v13, %v3933_v5 }
0x1462   :  { %v3939_v17 = vpop.eup %3938 }
0x1463   :  { %v2593_v18 = vmul.f32 %v3939_v17, %v3935_v6 }
0x1465   :  { %3792 = vmatprep.mubr.msk.f32.mxu1 %vm439_vm2, %v2593_v18 }
0x1466   :  { %3793 = vmatmul.mubr.msk.f32.vlgmr.msra.gmra.mxu1 %vm439_vm2, %v2594_v19 }
0x1467   :  { %3801 = vmatpush3.msra.mxu1 %v4235_v27  ;;  %3802 = vmatprep.mubr.msk.f32.mxu1 %vm349_vm1, %v2763_v0 }
0x1468   :  { %3810 = vmatprep.subr.mxu1 %v1687_v40 }
0x146a   :  { %3803 = vmatmul.mubr.msk.f32.vlgmr.msra.gmra.mxu1 %vm349_vm1, %v2765_v46 }
0x146b   :  { %3811 = vmatpush3.msra.mxu1 %v1687_v40 }
0x1526   :  { %v3794_v21 = vpop.f32.mrf.mxu1 }
0x1528   :  { %v2670_v22 = vpop.f32.mrf.mxu1 }
0x1529   :  { %3797 = vmatprep.mubr.msk.f32.mxu0 %vm349_vm1, %v2670_v22  ;;  %v1716_v22 = vld [vmem:[#allocation4 + $0x140] sm:$0xff] }
0x152a   :  { %3798 = vmatmul.mubr.msk.f32.vlgmr.msra.gmra.mxu0 %vm349_vm1, %v3794_v21  ;;  %v3804_v1 = vpop.f32.mrf.mxu1 }
0x152b   :  { %v2846_v23 = vmul.f32 0.35355338, %v3804_v1  ;;  %3806 = vmatpush3.xpose.msk.msra.mxu0 %vm439_vm2, %v1961_v11  ;;  %v1690_v11 = vld [vmem:[#allocation2 + $0x170] sm:$0xff] }
0x152c   :  { %v2836_v24 = vpop.f32.mrf.mxu1  ;;  %3815 = vmatprep.subr.mxu0 %v1691_v9 }
0x152d   :  { %v2848_v25 = vadd.f32 %v2846_v23, %v4083_v7  ;;  %v2845_v26 = vmul.f32 0.35355338, %v2836_v24  ;;  %v1718_v23 = vld [vmem:[#allocation4 + $0x150] sm:$0xff] }
0x152f   :  { %v2851_v27 = vmul.f32 1.442695, %v2848_v25  ;;  %v2847_v28 = vadd.f32 %v2845_v26, %v4085_v10  ;;  %v2491_v10 = vadd.f32 %v3784_v38, %v4255_v58  ;;  %v1714_v58 = vld [vmem:[#allocation4 + $0x130] sm:$0xff]  ;;  %v1719_v26 = vld [vmem:[#allocation4 + $0x158] sm:$0xff] }
0x1531   :  { %3940 = vpow2.f32 %v2851_v27  ;;  %v2849_v29 = vmul.f32 1.442695, %v2847_v28 }
0x1533   :  { %3942 = vpow2.f32 %v2849_v29  ;;  %v1699_v29 = vld [vmem:[#allocation2 + $0x1b8] sm:$0xff] }
0x1534   :  { %3826 = vmatprep.subr.mxu1 %v1699_v29 }
0x153e   :  { %v3941_v30 = vpop.eup %3940 }
0x153f   :  { %v2856_v31 = vsel %vm439_vm2, %v3941_v30, 0.0 }
0x1540   :  { %v3943_v32 = vpop.eup %3942  ;;  %2857 = vadd.xlane.f32.xlu0 %v2856_v31  ;;  %v1697_v31 = vld [vmem:[#allocation2 + $0x1a8] sm:$0xff] }
0x1541   :  { %v2853_v52 = vsel %vm439_vm2, %v3943_v32, 0.0 }
0x1542   :  { %2854 = vadd.xlane.f32.xlu1 %v2853_v52  ;;  %v1695_v52 = vld [vmem:[#allocation2 + $0x198] sm:$0xff] }
0x15c9   :  { %v2858_v45 = vpop.xlane.xlu0 %2857 }
0x15ca   :  { %3944 = vrcp.f32 %v2858_v45  ;;  %v1694_v45 = vld [vmem:[#allocation2 + $0x190] sm:$0xff] }
0x15cb   :  { %v2855_v33 = vpop.xlane.xlu1 %2854 }
0x15cc   :  { %3946 = vrcp.f32 %v2855_v33  ;;  %v1693_v33 = vld [vmem:[#allocation2 + $0x188] sm:$0xff] }
0x15d7   :  { %v3945_v7 = vpop.eup %3944 }
0x15d8   :  { %v2862_v36 = vmul.f32 %v3945_v7, %v3941_v30  ;;  %v1698_v30 = vld [vmem:[#allocation2 + $0x1b0] sm:$0xff]  ;;  %v1692_v7 = vld [vmem:[#allocation2 + $0x180] sm:$0xff] }
0x15d9   :  { %v3947_v34 = vpop.eup %3946 }
0x15da   :  { %v2861_v35 = vmul.f32 %v3947_v34, %v3943_v32  ;;  %v1696_v32 = vld [vmem:[#allocation2 + $0x1a0] sm:$0xff]  ;;  %v1721_v34 = vld [vmem:[#allocation4 + $0x168] sm:$0xff] }
0x15dc   :  { %3807 = vmatprep.mubr.msk.f32.mxu0 %vm439_vm2, %v2861_v35 }
0x15dd   :  { %3808 = vmatmul.mubr.msk.f32.vlgmr.msra.gmra.mxu0 %vm439_vm2, %v2862_v36  ;;  %v1720_v36 = vld [vmem:[#allocation4 + $0x160] sm:$0xff] }
0x15de   :  { %3816 = vmatpush3.msra.mxu0 %v1691_v9 }
0x15df   :  { %3817 = vmatprep.subr.mxu0 %v1690_v11 }
0x15e0   :  { %3818 = vmatpush3.msra.mxu0 %v1690_v11 }
0x15e1   :  { %3819 = vmatprep.subr.mxu0 %v1689_v51 }
0x15e2   :  { %3820 = vmatpush3.msra.mxu0 %v1689_v51 }
0x15e3   :  { %3821 = vmatprep.subr.mxu0 %v1688_v14 }
0x15e4   :  { %3822 = vmatpush3.msra.mxu0 %v1688_v14 }
0x15ea   :  { %v3799_v37 = vpop.f32.mrf.mxu0 }
0x15eb   :  { %v2761_v39 = vadd.f32 %v3799_v37, %v2491_v10 }
0x15ec   :  { %v2751_v41 = vpop.f32.mrf.mxu0 }
0x15ed   :  { %v2760_v49 = vadd.f32 %v2751_v41, %v2486_v44 }
0x169d   :  { %v3809_v42 = vpop.f32.mrf.mxu0 }
0x169f   :  { %v2938_v43 = vpop.f32.mrf.mxu0 }
0x16a0   :  { %3812 = vmatprep.mubr.msk.f32.mxu1 %vm349_vm1, %v2938_v43 }
0x16a1   :  { %3813 = vmatmul.mubr.msk.f32.vlgmr.msra.gmra.mxu1 %vm349_vm1, %v3809_v42 }
0x16a2   :  { %3827 = vmatpush3.msra.mxu1 %v1699_v29 }
0x16a3   :  { %3828 = vmatprep.subr.mxu1 %v1698_v30 }
0x16a4   :  { %3829 = vmatpush3.msra.mxu1 %v1698_v30 }
0x16a5   :  { %3830 = vmatprep.subr.mxu1 %v1697_v31 }
0x16a6   :  { %3831 = vmatpush3.msra.mxu1 %v1697_v31  ;;  %v3287_v31 = vld [vmem:[#allocation2 + $0x1d8] sm:$0xff] }
0x16a7   :  { %3832 = vmatprep.subr.mxu1 %v1696_v32  ;;  %3845 = vmatprep.subr.mxu0 %v3287_v31 }
0x16a8   :  { %3833 = vmatpush3.msra.mxu1 %v1696_v32  ;;  %v3286_v32 = vld [vmem:[#allocation2 + $0x1d0] sm:$0xff] }
0x16a9   :  { %3834 = vmatprep.subr.mxu1 %v1695_v52 }
0x16aa   :  { %3835 = vmatpush3.msra.mxu1 %v1695_v52  ;;  %v3285_v52 = vld [vmem:[#allocation2 + $0x1c8] sm:$0xff] }
0x16ab   :  { %3836 = vmatprep.subr.mxu1 %v1694_v45 }
0x16ac   :  { %3837 = vmatpush3.msra.mxu1 %v1694_v45  ;;  %v3284_v45 = vld [vmem:[#allocation2 + $0x1c0] sm:$0xff] }
0x16ad   :  { %3838 = vmatprep.subr.mxu1 %v1693_v33 }
0x16ae   :  { %3839 = vmatpush3.msra.mxu1 %v1693_v33 }
0x16af   :  { %3840 = vmatprep.subr.mxu1 %v1692_v7 }
0x16b0   :  { %3841 = vmatpush3.msra.mxu1 %v1692_v7 }
0x1761   :  { %v3814_v48 = vpop.f32.mrf.mxu1 }
0x1762   :  { %v3029_v50 = vadd.f32 %v3814_v48, %v2761_v39 }
0x1763   :  { %v3019_v54 = vpop.f32.mrf.mxu1 }
0x1764   :  { %v3031_v55 = vadd.f32 %v3029_v50, %v4175_v57  ;;  %v3028_v56 = vadd.f32 %v3019_v54, %v2760_v49 }
0x1766   :  { %v4288_v59 = vadd.f32 %v3031_v55, %v1715_v53  ;;  %v3030_v61 = vadd.f32 %v3028_v56, %v4178_v60 }
0x1768   :  { %v4291_v62 = vadd.f32 %v3030_v61, %v1714_v58  ;;  %v3037_v63 = vsel %vm107_vm0, %v4288_v59, 0.0 }
0x1769   :  { %3038 = vadd.xlane.f32.xlu1 %v3037_v63 }
0x176a   :  { %v3034_v47 = vsel %vm107_vm0, %v4291_v62, 0.0 }
0x176b   :  { %3035 = vadd.xlane.f32.xlu0 %v3034_v47 }
0x17f2   :  { %v3039_v2 = vpop.xlane.xlu1 %3038 }
0x17f3   :  { %v3041_v12 = vmul.f32 0.03125, %v3039_v2 }
0x17f4   :  { %v3036_v3 = vpop.xlane.xlu0 %3035 }
0x17f5   :  { %v3043_v57 = vsub.f32 %v4288_v59, %v3041_v12  ;;  %v3040_v4 = vmul.f32 0.03125, %v3036_v3 }
0x17f7   :  { %v3042_v5 = vsub.f32 %v4291_v62, %v3040_v4  ;;  %v3045_v15 = vmul.f32 %v3043_v57, %v3043_v57 }
0x17f9   :  { %v3049_v60 = vsel %vm107_vm0, %v3045_v15, 0.0  ;;  %v3044_v6 = vmul.f32 %v3042_v5, %v3042_v5 }
0x17fa   :  { %3050 = vadd.xlane.f32.xlu1 %v3049_v60 }
0x17fb   :  { %v3046_v8 = vsel %vm107_vm0, %v3044_v6, 0.0 }
0x17fc   :  { %3047 = vadd.xlane.f32.xlu0 %v3046_v8 }
0x1883   :  { %v3051_v16 = vpop.xlane.xlu1 %3050 }
0x1884   :  { %v3053_v13 = vmul.f32 0.03125, %v3051_v16 }
0x1885   :  { %v3048_v17 = vpop.xlane.xlu0 %3047 }
0x1886   :  { %v3055_v18 = vadd.f32 1e-05, %v3053_v13  ;;  %v3052_v19 = vmul.f32 0.03125, %v3048_v17 }
0x1888   :  { %3948 = vrsqrt.f32 %v3055_v18  ;;  %v3054_v0 = vadd.f32 1e-05, %v3052_v19 }
0x188a   :  { %3950 = vrsqrt.f32 %v3054_v0 }
0x1895   :  { %v3949_v46 = vpop.eup %3948 }
0x1896   :  { %v3059_v38 = vmul.f32 %v3949_v46, %v3043_v57 }
0x1897   :  { %v3951_v21 = vpop.eup %3950 }
0x1898   :  { %v3058_v1 = vmul.f32 %v3951_v21, %v3042_v5  ;;  %v3061_v24 = vmul.f32 %v3059_v38, %v1717_v20 }
0x189a   :  { %v3060_v25 = vmul.f32 %v3058_v1, %v1716_v22  ;;  %v3063_v28 = vadd.f32 %v3061_v24, %v1719_v26 }
0x189c   :  { %v3062_v27 = vadd.f32 %v3060_v25, %v1718_v23 }
0x189e   :  { %3823 = vmatprep.mubr.msk.f32.mxu0 %vm107_vm0, %v3062_v27 }
0x189f   :  { %3824 = vmatmul.mubr.msk.f32.vlgmr.msra.gmra.mxu0 %vm107_vm0, %v3063_v28 }
0x18a0   :  { %3846 = vmatpush3.msra.mxu0 %v3287_v31 }
0x18a1   :  { %3847 = vmatprep.subr.mxu0 %v3286_v32 }
0x18a2   :  { %3848 = vmatpush3.msra.mxu0 %v3286_v32 }
0x18a3   :  { %3849 = vmatprep.subr.mxu0 %v3285_v52 }
0x18a4   :  { %3850 = vmatpush3.msra.mxu0 %v3285_v52 }
0x18a5   :  { %3851 = vmatprep.subr.mxu0 %v3284_v45 }
0x18a6   :  { %3852 = vmatpush3.msra.mxu0 %v3284_v45 }
0x195f   :  { %v3825_v35 = vpop.f32.mrf.mxu0 }
0x1960   :  { %v3142_v10 = vadd.f32 %v3825_v35, %v1721_v34  ;;  %v1722_v34 = vld [vmem:[#allocation4 + $0x170] sm:$0xff] }
0x1961   :  { %v3136_v37 = vpop.f32.mrf.mxu0 }
0x1962   :  { %v3148_v39 = vmul.f32 0.70710677, %v3142_v10  ;;  %v3137_v40 = vadd.f32 %v3136_v37, %v1720_v36  ;;  %v3146_v28 = vmul.f32 0.5, %v3142_v10  ;;  %v1723_v36 = vld [vmem:[#allocation4 + $0x178] sm:$0xff] }
0x1964   :  { %v3150_v41 = vand.u32 2147483647, %v3148_v39  ;;  %v3147_v42 = vmul.f32 0.70710677, %v3137_v40  ;;  %vm3190_vm7 = vcmp.lt.f32.partialorder %v3148_v39, 0.0  ;;  %v3145_v26 = vmul.f32 0.5, %v3137_v40 }
0x1965   :  { %v3289_v40 = vld [vmem:[#allocation4 + $0x188] sm:$0xff] }
0x1966   :  { %v3152_v43 = vmul.f32 0.3275911, %v3150_v41  ;;  %v3149_v44 = vand.u32 2147483647, %v3147_v42  ;;  %v3178_v53 = vsub.f32 0.0, %v3150_v41  ;;  %vm3189_vm8 = vcmp.lt.f32.partialorder %v3147_v42, 0.0 }
0x1967   :  { %v3288_v42 = vld [vmem:[#allocation4 + $0x180] sm:$0xff] }
0x1968   :  { %v3154_v48 = vadd.f32 1.0, %v3152_v43  ;;  %v3151_v49 = vmul.f32 0.3275911, %v3149_v44  ;;  %v3177_v54 = vsub.f32 0.0, %v3149_v44  ;;  %v3180_v55 = vmul.f32 %v3178_v53, %v3150_v41 }
0x196a   :  { %3952 = vrcp.f32 %v3154_v48  ;;  %v3153_v50 = vadd.f32 1.0, %v3151_v49  ;;  %v3179_v58 = vmul.f32 %v3177_v54, %v3149_v44  ;;  %v3183_v63 = vmul.f32 1.442695, %v3180_v55 }
0x196c   :  { %3954 = vrcp.f32 %v3153_v50  ;;  %v3181_v3 = vmul.f32 1.442695, %v3179_v58 }
0x196d   :  { %3956 = vpow2.f32 %v3183_v63 }
0x196e   :  { %3958 = vpow2.f32 %v3181_v3 }
0x1977   :  { %v3953_v56 = vpop.eup %3952 }
0x1978   :  { %v3160_v61 = vmul.f32 1.0614054, %v3953_v56 }
0x1979   :  { %v3955_v47 = vpop.eup %3954 }
0x197a   :  { %v3162_v2 = vadd.f32 -1.4531521, %v3160_v61  ;;  %v3159_v12 = vmul.f32 1.0614054, %v3955_v47  ;;  %v3957_v17 = vpop.eup %3956 }
0x197b   :  { %v3959_v46 = vpop.eup %3958 }
0x197c   :  { %v3164_v57 = vmul.f32 %v3953_v56, %v3162_v2  ;;  %v3161_v4 = vadd.f32 -1.4531521, %v3159_v12 }
0x197e   :  { %v3166_v5 = vadd.f32 1.4214138, %v3164_v57  ;;  %v3163_v15 = vmul.f32 %v3955_v47, %v3161_v4 }
0x1980   :  { %v3168_v60 = vmul.f32 %v3953_v56, %v3166_v5  ;;  %v3165_v6 = vadd.f32 1.4214138, %v3163_v15 }
0x1982   :  { %v3170_v8 = vadd.f32 -0.28449672, %v3168_v60  ;;  %v3167_v9 = vmul.f32 %v3955_v47, %v3165_v6 }
0x1984   :  { %v3172_v11 = vmul.f32 %v3953_v56, %v3170_v8  ;;  %v3169_v51 = vadd.f32 -0.28449672, %v3167_v9 }
0x1986   :  { %v3174_v14 = vadd.f32 0.2548296, %v3172_v11  ;;  %v3171_v16 = vmul.f32 %v3955_v47, %v3169_v51 }
0x1988   :  { %v3176_v13 = vmul.f32 %v3953_v56, %v3174_v14  ;;  %v3173_v18 = vadd.f32 0.2548296, %v3171_v16 }
0x198a   :  { %v3186_v19 = vmul.f32 %v3957_v17, %v3176_v13  ;;  %v3175_v0 = vmul.f32 %v3955_v47, %v3173_v18 }
0x198c   :  { %v3188_v38 = vsub.f32 1.0, %v3186_v19  ;;  %v3185_v20 = vmul.f32 %v3959_v46, %v3175_v0 }
0x198e   :  { %v3192_v21 = vsub.f32 0.0, %v3188_v38  ;;  %v3187_v22 = vsub.f32 1.0, %v3185_v20 }
0x1990   :  { %v3194_v1 = vsel %vm3190_vm7, %v3192_v21, %v3188_v38  ;;  %v3191_v23 = vsub.f32 0.0, %v3187_v22 }
0x1991   :  { %v3196_v24 = vadd.f32 1.0, %v3194_v1 }
0x1992   :  { %v3193_v25 = vsel %vm3189_vm8, %v3191_v23, %v3187_v22 }
0x1993   :  { %v3195_v27 = vadd.f32 1.0, %v3193_v25  ;;  %v3198_v30 = vmul.f32 %v3196_v24, %v3146_v28 }
0x1995   :  { %v3197_v29 = vmul.f32 %v3195_v27, %v3145_v26 }
0x1997   :  { %3842 = vmatprep.mubr.msk.f32.mxu1 %vm1586_vm6, %v3197_v29 }
0x1998   :  { %3843 = vmatmul.mubr.msk.f32.vlgmr.msra.gmra.mxu1 %vm1586_vm6, %v3198_v30 }
0x1a58   :  { %v3844_v33 = vpop.f32.mrf.mxu1 }
0x1a59   :  { %v3281_v7 = vadd.f32 %v3844_v33, %v4288_v59 }
0x1a5a   :  { %v3271_v35 = vpop.f32.mrf.mxu1 }
0x1a5b   :  { %v3280_v10 = vadd.f32 %v3271_v35, %v4291_v62  ;;  %v3283_v39 = vadd.f32 %v3281_v7, %v1723_v36 }
0x1a5d   :  { %v3282_v37 = vadd.f32 %v3280_v10, %v1722_v34 }
0x1a5f   :  { %3853 = vmatprep.mubr.msk.f32.mxu0 %vm107_vm0, %v3282_v37 }
0x1a60   :  { %3854 = vmatmul.mubr.msk.f32.vlgmr.msra.gmra.mxu0 %vm107_vm0, %v3283_v39 }
0x1b20   :  { %v3855_v41 = vpop.f32.mrf.mxu0 }
0x1b21   :  { %v3368_v43 = vadd.f32 %v3855_v41, %v3289_v40 }
0x1b22   :  { %v3362_v44 = vpop.f32.mrf.mxu0 }
0x1b23   :  { %3372 = vst [vmem:[%s4318_s3 + $0x8] sm:$0xff] %v3368_v43  ;;  %v3363_v59 = vadd.f32 %v3362_v44, %v3288_v42 }
0x1b25   :  { %3371 = vst [vmem:[%s4318_s3] sm:$0xff] %v3363_v59 }
0x1b26   :  { %3377 = vsyncpa [#allocation3], 1 }
0x1b27   :  { %3378 = vsyncpa [#allocation5], 1 }

</bundles_post_ra>
